<compile_context>
chip_gen: v7x
topology: tpu7x:2x2x1
jax: 0.10.0
libtpu: 0.0.40
codegen_flags: <defaults>
</compile_context>

<pallas_src>
import functools

import jax
import jax.numpy as jnp
from jax.experimental import pallas as pl
from jax.experimental.pallas import tpu as pltpu


# ------------------------------ fused kernel -------------------------------

def _fused_kernel(x0_ref, wslab_ref, bslab_ref, ints_ref, z_ref, *,
                  B, T, H, S, Vpad, TBpad, seg, bseg):
    f32 = jnp.float32
    bf16 = jnp.bfloat16

    def W(name):                                  # bf16 view into the weight slab
        off, r, c = seg[name]
        return wslab_ref[off:off + r, 0:c]

    ball = bslab_ref[...]                         # (8, 128) f32, one load

    def Bv(name):                                 # (1, c) f32 bias row
        row, c = bseg[name]
        return ball[row:row + 1, 0:c]

    # ---------------- image branch: 3 chained block matmuls ----------------
    # x0 rows ordered (s, b) with s = oh3*cout + ow3; cols (i, j, c) of the
    # disjoint 8x8 input block feeding final conv position s.
    y = jnp.dot(x0_ref[...], W("w1"), preferred_element_type=f32)
    y = jnp.maximum(y + Bv("b1"), 0.0)
    y = jnp.dot(y.astype(bf16), W("w2"), preferred_element_type=f32)
    y = jnp.maximum(y + Bv("b2"), 0.0)
    y = jnp.dot(y.astype(bf16), W("w3"), preferred_element_type=f32)
    y3 = jnp.maximum(y + Bv("b3"), 0.0)           # (S*B, F3) f32

    # --------------------------- text branch (GRU) -------------------------
    ints = ints_ref[...]                          # (TBpad + B, 1) int32
    ids = ints[0:T * B, :]                        # (T*B, 1), rows (t, b)
    lens = ints[TBpad:TBpad + B, :]               # (B, 1)

    # Embedding lookup + input projection fused at init (tproj = emb @ W_ih^T);
    # the lookup is a one-hot matmul, so gi for all timesteps is ONE dot.
    iota = jax.lax.broadcasted_iota(jnp.int32, (T * B, Vpad), 1)
    onehot = jnp.where(ids == iota, 1.0, 0.0).astype(bf16)
    gi = jnp.dot(onehot, W("tproj"), preferred_element_type=f32) + Bv("bih")

    whh = W("whh")                                # (H, 3H), gates [r|z|n]
    bhh = Bv("bhh")
    h = jnp.zeros((B, H), f32)                    # hidden carried in vregs
    # T is small & static -> full unroll is fine.
    # TODO(synk): switch to lax.fori_loop (+ pl.ds slices of gi and a
    # precomputed (T,B,1) mask) if T grows enough to pressure vregs.
    for t in range(T):
        # ONE fused matmul per step — the serial critical path of the kernel.
        gh = jnp.dot(h.astype(bf16), whh, preferred_element_type=f32) + bhh
        git = gi[t * B:(t + 1) * B, :]
        a = git + gh
        r = jax.nn.sigmoid(a[:, 0:H])
        zg = jax.nn.sigmoid(a[:, H:2 * H])
        n = jnp.tanh(git[:, 2 * H:3 * H] + r * gh[:, 2 * H:3 * H])
        h_new = (1.0 - zg) * n + zg * h
        # pack_padded_sequence semantics: hidden frozen after the last valid
        # step (lengths >= 1 required, as in PyTorch itself).
        h = jnp.where(lens > t, h_new, h)

    # ------------------ head: single lane-dense fc matmul ------------------
    # Regroup y3 rows (s, b) -> (B, S*F3) columns (s, f); torch's NCHW flatten
    # order (f, s) was absorbed into wfci at init.  Output (B, 2*z_dim) is a
    # small masked store — acceptable at this size.
    head_img = jnp.concatenate(
        [y3[s * B:(s + 1) * B, :] for s in range(S)], axis=1)   # (B, S*F3)
    acc = jnp.dot(head_img.astype(bf16), W("wfci"), preferred_element_type=f32)
    acc = acc + jnp.dot(h.astype(bf16), W("wfct"), preferred_element_type=f32)
    z_ref[...] = acc + Bv("bfc")


# --------------------------- weight preparation ----------------------------

def get_conv_output_dim(I, K, P, S):
    return int((I - K + 2 * P) / float(S) + 1)


def gen_32_conv_output_dim(s):
    for _ in range(3):
        s = get_conv_output_dim(s, 2, 0, 2)
    return s


def _round_up(x, m):
    return ((x + m - 1) // m) * m


def _block_conv_weight(w, b, in_grid):
    """Expand a 2x2 / stride-2 / pad-0 conv into a block matmul weight acting
    on a flattened in_grid x in_grid patch: rows (i, j, c) -> cols (p, q, oc)."""
    OC, IC, KH, KW = w.shape
    assert (KH, KW) == (2, 2), "block-matmul conv assumes 2x2 kernels"
    out_grid = in_grid // 2
    big = jnp.zeros((in_grid * in_grid * IC, out_grid * out_grid * OC), jnp.float32)
    for p in range(out_grid):
        for q in range(out_grid):
            for kh in range(2):
                for kw in range(2):
                    i, j = 2 * p + kh, 2 * q + kw
                    r0 = (i * in_grid + j) * IC
                    c0 = (p * out_grid + q) * OC
                    big = big.at[r0:r0 + IC, c0:c0 + OC].set(w[:, :, kh, kw].T)
    b_big = jnp.tile(b, out_grid * out_grid).reshape(1, -1)
    return big, b_big


def _pack_row_slab(named_mats, dtype):
    """Stack 2-D matrices along rows into one slab (one DMA instead of many).
    Each segment's rows pad to a multiple of 8 (sublane-aligned views) and the
    lane width pads to a multiple of 128 (lane-dense DMA)."""
    lane = _round_up(max(m.shape[1] for _, m in named_mats), 128)
    seg, chunks, off = {}, [], 0
    for name, m in named_mats:
        r, c = m.shape
        rp = _round_up(r, 8)
        buf = jnp.zeros((rp, lane), jnp.float32).at[:r, :c].set(m.astype(jnp.float32))
        chunks.append(buf)
        seg[name] = (off, r, c)
        off += rp
    return jnp.concatenate(chunks, axis=0).astype(dtype), seg


def prepare_kernel_params(params, img_size):
    """One-time (outside jit) re-layout:
      * convs -> block matmul weights,
      * embedding table folded into the GRU input projection (vocab x 3H),
      * GRU gate weights fused into single (., 3H) slabs, order [r|z|n],
      * fc weight split / permuted to absorb the torch NCHW flatten,
      * everything packed into ONE bf16 weight slab + ONE f32 bias slab.
    Returns (kp: device arrays, meta: static Python layout info).
    NOTE: w1/w2 are block-sparse (zero-padded K) — fine while latency-bound at
    these sizes; switch to a dense per-layer (4*IC -> OC) form if n_filters /
    img_size / batch are scaled up (MXU-throughput cliff)."""
    assert img_size % 8 == 0, "conv-as-block-matmul needs img_size % 8 == 0"
    cout = gen_32_conv_output_dim(img_size)
    S = cout * cout
    F3 = params["conv3_w"].shape[0]
    Z2 = params["fc_w"].shape[0]
    H = params["gru_w_hh"].shape[1]
    V = params["emb"].shape[0]
    Vpad = _round_up(V, 8)

    w1, b1 = _block_conv_weight(params["conv1_w"], params["conv1_b"], 8)
    w2, b2 = _block_conv_weight(params["conv2_w"], params["conv2_b"], 4)
    w3, b3 = _block_conv_weight(params["conv3_w"], params["conv3_b"], 2)

    # GRU: torch weights are (3H, X) stacked [r|z|n]; transpose -> (X, 3H).
    wih = params["gru_w_ih"].T                                  # (E, 3H)
    whh = params["gru_w_hh"].T                                  # (H, 3H)
    tproj = params["emb"].astype(jnp.float32) @ wih             # (V, 3H)
    tproj = jnp.zeros((Vpad, 3 * H), jnp.float32).at[:V].set(tproj)
    bih = params["gru_b_ih"].reshape(1, 3 * H)
    bhh = params["gru_b_hh"].reshape(1, 3 * H)

    fc_w = params["fc_w"]
    # fc image columns are in torch NCHW-flatten order f*S + s; regroup to
    # (s, f) row order so the head is one dense K = S*F3 dot.
    wfci = jnp.transpose(fc_w[:, :F3 * S].reshape(Z2, F3, S), (2, 1, 0)).reshape(S * F3, Z2)
    wfct = fc_w[:, F3 * S:].T                                   # (H, Z2)

    wslab, seg = _pack_row_slab(
        [("w1", w1), ("w2", w2), ("w3", w3), ("tproj", tproj), ("whh", whh),
         ("wfci", wfci), ("wfct", wfct)], jnp.bfloat16)

    biases = [("b1", b1), ("b2", b2), ("b3", b3), ("bih", bih), ("bhh", bhh),
              ("bfc", params["fc_b"].reshape(1, Z2))]
    blane = _round_up(max(b.shape[1] for _, b in biases), 128)
    bslab = jnp.zeros((_round_up(len(biases), 8), blane), jnp.float32)
    bseg = {}
    for i, (name, b) in enumerate(biases):
        bslab = bslab.at[i, :b.shape[1]].set(b[0])
        bseg[name] = (i, b.shape[1])

    kp = {"wslab": wslab, "bslab": bslab}
    meta = {"seg": seg, "bseg": bseg, "H": H, "S": S, "F3": F3,
            "Z2": Z2, "Vpad": Vpad, "cout": cout}
    return kp, meta


# ------------------------------ forward pass -------------------------------

def image_text_encoder_forward(meta, kp, img, text, length):
    B, C, Himg, Wimg = img.shape
    assert Himg == Wimg and (Himg // 8) ** 2 == meta["S"]
    T = text.shape[1]
    H, S, Z2, Vpad, cout = meta["H"], meta["S"], meta["Z2"], meta["Vpad"], meta["cout"]
    seg = meta["seg"]
    TB = T * B
    TBpad = _round_up(TB, 8)

    # Non-overlapping 8x8 blocks -> rows (s, b), cols (i, j, c): the only
    # HBM-side relayout; everything downstream stays in VMEM / vregs.
    x0 = img.reshape(B, C, cout, 8, cout, 8)
    x0 = jnp.transpose(x0, (2, 4, 0, 3, 5, 1)).reshape(S * B, 64 * C)
    x0 = x0.astype(jnp.bfloat16)

    # Token ids (time-major) + lengths packed into one small int32 operand.
    ids = jnp.transpose(text.astype(jnp.int32), (1, 0)).reshape(TB, 1)
    lens = length.astype(jnp.int32).reshape(B, 1)
    ints = (jnp.zeros((TBpad + B, 1), jnp.int32)
            .at[0:TB, :].set(ids)
            .at[TBpad:TBpad + B, :].set(lens))

    mm = [(S * B, seg["w1"][1], seg["w1"][2]),
          (S * B, seg["w2"][1], seg["w2"][2]),
          (S * B, seg["w3"][1], seg["w3"][2]),
          (TB, seg["tproj"][1], seg["tproj"][2]),
          (TB, seg["whh"][1], seg["whh"][2]),
          (B, seg["wfci"][1], seg["wfci"][2]),
          (B, seg["wfct"][1], seg["wfct"][2])]
    cost = pl.CostEstimate(
        flops=2 * sum(m * k * n for m, k, n in mm),
        transcendentals=3 * T * B * H,
        bytes_accessed=(x0.size * 2 + kp["wslab"].size * 2
                        + kp["bslab"].size * 4 + ints.size * 4 + B * Z2 * 4))

    kernel = functools.partial(
        _fused_kernel, B=B, T=T, H=H, S=S, Vpad=Vpad, TBpad=TBpad,
        seg=seg, bseg=meta["bseg"])

    z = pl.pallas_call(
        kernel,
        out_shape=jax.ShapeDtypeStruct((B, Z2), jnp.float32),
        in_specs=[pl.BlockSpec(memory_space=pltpu.MemorySpace.VMEM)] * 4,
        out_specs=pl.BlockSpec(memory_space=pltpu.MemorySpace.VMEM),
        compiler_params=pltpu.CompilerParams(vmem_limit_bytes=32 * 1024 * 1024),
        cost_estimate=cost,
    )(x0, kp["wslab"], kp["bslab"], ints)

    z_mu, z_logvar = jnp.split(z, 2, axis=1)
    return z_mu, z_logvar


# ------------------------------ init / demo --------------------------------

def init_params(key, *, channels, img_size, z_dim, emb_dim, vocab,
                text_hidden_dim, n_filters):
    cout = gen_32_conv_output_dim(img_size)
    ks = jax.random.split(key, 12)
    sc = 0.05
    return {
        "emb":      sc * jax.random.normal(ks[0], (vocab, emb_dim), jnp.float32),
        "conv1_w":  sc * jax.random.normal(ks[1], (n_filters, channels, 2, 2), jnp.float32),
        "conv1_b":  sc * jax.random.normal(ks[2], (n_filters,), jnp.float32),
        "conv2_w":  sc * jax.random.normal(ks[3], (n_filters * 2, n_filters, 2, 2), jnp.float32),
        "conv2_b":  sc * jax.random.normal(ks[4], (n_filters * 2,), jnp.float32),
        "conv3_w":  sc * jax.random.normal(ks[5], (n_filters * 4, n_filters * 2, 2, 2), jnp.float32),
        "conv3_b":  sc * jax.random.normal(ks[6], (n_filters * 4,), jnp.float32),
        "gru_w_ih": sc * jax.random.normal(ks[7], (3 * text_hidden_dim, emb_dim), jnp.float32),
        "gru_w_hh": sc * jax.random.normal(ks[8], (3 * text_hidden_dim, text_hidden_dim), jnp.float32),
        "gru_b_ih": sc * jax.random.normal(ks[9], (3 * text_hidden_dim,), jnp.float32),
        "gru_b_hh": sc * jax.random.normal(ks[10], (3 * text_hidden_dim,), jnp.float32),
        "fc_w":     sc * jax.random.normal(
            ks[11], (z_dim * 2, n_filters * 4 * cout ** 2 + text_hidden_dim), jnp.float32),
        "fc_b":     jnp.zeros((z_dim * 2,), jnp.float32),
    }


if __name__ == "__main__":
    B, C, IMG = 2, 3, 16          # batch, channels, img_size (16 -> cout = 2)
    N_FILTERS = 8
    Z_DIM = 16
    TEXT_HIDDEN = 32
    EMB_DIM = 16
    VOCAB = 20
    T = 8                          # max sequence length

    key = jax.random.PRNGKey(0)
    k_params, k_img, k_txt = jax.random.split(key, 3)

    params = init_params(k_params, channels=C, img_size=IMG, z_dim=Z_DIM,
                         emb_dim=EMB_DIM, vocab=VOCAB,
                         text_hidden_dim=TEXT_HIDDEN, n_filters=N_FILTERS)
    kp, meta = prepare_kernel_params(params, IMG)   # one-time weight re-layout

    img = jax.random.normal(k_img, (B, C, IMG, IMG), jnp.float32)
    text = jax.random.randint(k_txt, (B, T), 0, VOCAB, dtype=jnp.int32)
    length = jnp.array([T, 5], dtype=jnp.int32)

    fwd = jax.jit(functools.partial(image_text_encoder_forward, meta))
    z_mu, z_logvar = fwd(kp, img, text, length)
    jax.block_until_ready((z_mu, z_logvar))

    assert z_mu.shape == (B, Z_DIM) and z_logvar.shape == (B, Z_DIM)
    assert bool(jnp.all(jnp.isfinite(z_mu))) and bool(jnp.all(jnp.isfinite(z_logvar)))
    print("KERNEL_OK")
</pallas_src>

<mosaic_0001>
module attributes {stable_mosaic.version = 11 : i64} {
  func.func @_fused_kernel(%arg0: memref<8x192xbf16, #tpu.memory_space<vmem>>, %arg1: memref<600x128xbf16, #tpu.memory_space<vmem>>, %arg2: memref<8x128xf32, #tpu.memory_space<vmem>>, %arg3: memref<18x1xi32, #tpu.memory_space<vmem>>, %arg4: memref<2x32xf32, #tpu.memory_space<vmem>>) attributes {dimension_semantics = [], scalar_prefetch = 0 : i64, scratch_operands = 0 : i64, tpu.core_type = #tpu.core_type<tc>} {
    %c0 = arith.constant 0 : index
    %c0_0 = arith.constant 0 : index
    %0 = vector.load %arg2[%c0, %c0_0] : memref<8x128xf32, #tpu.memory_space<vmem>>, vector<8x128xf32>
    %c0_1 = arith.constant 0 : index
    %c0_2 = arith.constant 0 : index
    %1 = vector.load %arg0[%c0_1, %c0_2] : memref<8x192xbf16, #tpu.memory_space<vmem>>, vector<8x192xbf16>
    %c0_3 = arith.constant 0 : index
    %c0_4 = arith.constant 0 : index
    %2 = vector.load %arg1[%c0_3, %c0_4] : memref<600x128xbf16, #tpu.memory_space<vmem>>, vector<192x128xbf16>
    %cst = arith.constant dense<0.000000e+00> : vector<8x128xf32>
    %3 = tpu.matmul %1, %2, %cst {dimension_numbers = #tpu.dot_dimension_numbers<[1], [0], [0], [1], [0, 0, 1, 1], [], []>} : vector<8x192xbf16>, vector<192x128xbf16>, vector<8x128xf32> -> vector<8x128xf32>
    %4 = vector.extract_strided_slice %0 {offsets = [0, 0], sizes = [1, 128], strides = [1, 1]} : vector<8x128xf32> to vector<1x128xf32>
    %5 = vector.broadcast %4 : vector<1x128xf32> to vector<8x128xf32>
    %6 = arith.addf %3, %5 : vector<8x128xf32>
    %cst_5 = arith.constant 0.000000e+00 : f32
    %7 = vector.broadcast %cst_5 : f32 to vector<8x128xf32>
    %8 = arith.maximumf %6, %7 : vector<8x128xf32>
    %9 = arith.truncf %8 : vector<8x128xf32> to vector<8x128xbf16>
    %c192 = arith.constant 192 : index
    %c0_6 = arith.constant 0 : index
    %10 = vector.load %arg1[%c192, %c0_6] : memref<600x128xbf16, #tpu.memory_space<vmem>>, vector<128x64xbf16>
    %cst_7 = arith.constant dense<0.000000e+00> : vector<8x64xf32>
    %11 = tpu.matmul %9, %10, %cst_7 {dimension_numbers = #tpu.dot_dimension_numbers<[1], [0], [0], [1], [0, 0, 1, 1], [], []>} : vector<8x128xbf16>, vector<128x64xbf16>, vector<8x64xf32> -> vector<8x64xf32>
    %12 = vector.extract_strided_slice %0 {offsets = [1, 0], sizes = [1, 64], strides = [1, 1]} : vector<8x128xf32> to vector<1x64xf32>
    %13 = vector.broadcast %12 : vector<1x64xf32> to vector<8x64xf32>
    %14 = arith.addf %11, %13 : vector<8x64xf32>
    %cst_8 = arith.constant 0.000000e+00 : f32
    %15 = vector.broadcast %cst_8 : f32 to vector<8x64xf32>
    %16 = arith.maximumf %14, %15 : vector<8x64xf32>
    %17 = arith.truncf %16 : vector<8x64xf32> to vector<8x64xbf16>
    %c320 = arith.constant 320 : index
    %c0_9 = arith.constant 0 : index
    %18 = vector.load %arg1[%c320, %c0_9] : memref<600x128xbf16, #tpu.memory_space<vmem>>, vector<64x32xbf16>
    %cst_10 = arith.constant dense<0.000000e+00> : vector<8x32xf32>
    %19 = tpu.matmul %17, %18, %cst_10 {dimension_numbers = #tpu.dot_dimension_numbers<[1], [0], [0], [1], [0, 0, 1, 1], [], []>} : vector<8x64xbf16>, vector<64x32xbf16>, vector<8x32xf32> -> vector<8x32xf32>
    %20 = vector.extract_strided_slice %0 {offsets = [2, 0], sizes = [1, 32], strides = [1, 1]} : vector<8x128xf32> to vector<1x32xf32>
    %21 = vector.broadcast %20 : vector<1x32xf32> to vector<8x32xf32>
    %22 = arith.addf %19, %21 : vector<8x32xf32>
    %cst_11 = arith.constant 0.000000e+00 : f32
    %23 = vector.broadcast %cst_11 : f32 to vector<8x32xf32>
    %24 = arith.maximumf %22, %23 : vector<8x32xf32>
    %c0_12 = arith.constant 0 : index
    %c0_13 = arith.constant 0 : index
    %25 = vector.load %arg3[%c0_12, %c0_13] : memref<18x1xi32, #tpu.memory_space<vmem>>, vector<18x1xi32>
    %26 = vector.extract_strided_slice %25 {offsets = [0, 0], sizes = [16, 1], strides = [1, 1]} : vector<18x1xi32> to vector<16x1xi32>
    %27 = vector.extract_strided_slice %25 {offsets = [16, 0], sizes = [2, 1], strides = [1, 1]} : vector<18x1xi32> to vector<2x1xi32>
    %28 = tpu.iota {dimensions = array<i32: 1>} : vector<16x24xi32>
    %29 = vector.broadcast %26 : vector<16x1xi32> to vector<16x24xi32>
    %30 = arith.cmpi eq, %29, %28 : vector<16x24xi32>
    %cst_14 = arith.constant 1.000000e+00 : f32
    %cst_15 = arith.constant 0.000000e+00 : f32
    %31 = vector.broadcast %cst_14 : f32 to vector<16x24xf32>
    %32 = vector.broadcast %cst_15 : f32 to vector<16x24xf32>
    %33 = arith.select %30, %31, %32 : vector<16x24xi1>, vector<16x24xf32>
    %34 = arith.truncf %33 : vector<16x24xf32> to vector<16x24xbf16>
    %c384 = arith.constant 384 : index
    %c0_16 = arith.constant 0 : index
    %35 = vector.load %arg1[%c384, %c0_16] : memref<600x128xbf16, #tpu.memory_space<vmem>>, vector<24x96xbf16>
    %cst_17 = arith.constant dense<0.000000e+00> : vector<16x96xf32>
    %36 = tpu.matmul %34, %35, %cst_17 {dimension_numbers = #tpu.dot_dimension_numbers<[1], [0], [0], [1], [0, 0, 1, 1], [], []>} : vector<16x24xbf16>, vector<24x96xbf16>, vector<16x96xf32> -> vector<16x96xf32>
    %37 = vector.extract_strided_slice %0 {offsets = [3, 0], sizes = [1, 96], strides = [1, 1]} : vector<8x128xf32> to vector<1x96xf32>
    %38 = vector.broadcast %37 : vector<1x96xf32> to vector<16x96xf32>
    %39 = arith.addf %36, %38 : vector<16x96xf32>
    %c408 = arith.constant 408 : index
    %c0_18 = arith.constant 0 : index
    %40 = vector.load %arg1[%c408, %c0_18] : memref<600x128xbf16, #tpu.memory_space<vmem>>, vector<32x96xbf16>
    %41 = vector.extract_strided_slice %0 {offsets = [4, 0], sizes = [1, 96], strides = [1, 1]} : vector<8x128xf32> to vector<1x96xf32>
    %cst_19 = arith.constant 0.000000e+00 : f32
    %42 = vector.broadcast %cst_19 : f32 to vector<2x32xf32>
    %43 = arith.truncf %42 : vector<2x32xf32> to vector<2x32xbf16>
    %cst_20 = arith.constant dense<0.000000e+00> : vector<2x96xf32>
    %44 = tpu.matmul %43, %40, %cst_20 {dimension_numbers = #tpu.dot_dimension_numbers<[1], [0], [0], [1], [0, 0, 1, 1], [], []>} : vector<2x32xbf16>, vector<32x96xbf16>, vector<2x96xf32> -> vector<2x96xf32>
    %45 = vector.broadcast %41 : vector<1x96xf32> to vector<2x96xf32>
    %46 = arith.addf %44, %45 : vector<2x96xf32>
    %47 = vector.extract_strided_slice %39 {offsets = [0, 0], sizes = [2, 96], strides = [1, 1]} : vector<16x96xf32> to vector<2x96xf32>
    %48 = arith.addf %47, %46 : vector<2x96xf32>
    %49 = vector.extract_strided_slice %48 {offsets = [0, 0], sizes = [2, 32], strides = [1, 1]} : vector<2x96xf32> to vector<2x32xf32>
    %50 = arith.negf %49 : vector<2x32xf32>
    %51 = math.exp %50 : vector<2x32xf32>
    %cst_21 = arith.constant 1.000000e+00 : f32
    %52 = vector.broadcast %cst_21 : f32 to vector<2x32xf32>
    %53 = arith.addf %52, %51 : vector<2x32xf32>
    %54 = arith.divf %52, %53 : vector<2x32xf32>
    %55 = vector.extract_strided_slice %48 {offsets = [0, 32], sizes = [2, 32], strides = [1, 1]} : vector<2x96xf32> to vector<2x32xf32>
    %56 = arith.negf %55 : vector<2x32xf32>
    %57 = math.exp %56 : vector<2x32xf32>
    %cst_22 = arith.constant 1.000000e+00 : f32
    %58 = vector.broadcast %cst_22 : f32 to vector<2x32xf32>
    %59 = arith.addf %58, %57 : vector<2x32xf32>
    %60 = arith.divf %58, %59 : vector<2x32xf32>
    %61 = vector.extract_strided_slice %47 {offsets = [0, 64], sizes = [2, 32], strides = [1, 1]} : vector<2x96xf32> to vector<2x32xf32>
    %62 = vector.extract_strided_slice %46 {offsets = [0, 64], sizes = [2, 32], strides = [1, 1]} : vector<2x96xf32> to vector<2x32xf32>
    %63 = arith.mulf %54, %62 : vector<2x32xf32>
    %64 = arith.addf %61, %63 : vector<2x32xf32>
    %65 = math.tanh %64 : vector<2x32xf32>
    %cst_23 = arith.constant 1.000000e+00 : f32
    %66 = vector.broadcast %cst_23 : f32 to vector<2x32xf32>
    %67 = arith.subf %66, %60 : vector<2x32xf32>
    %68 = arith.mulf %67, %65 : vector<2x32xf32>
    %69 = arith.mulf %60, %42 : vector<2x32xf32>
    %70 = arith.addf %68, %69 : vector<2x32xf32>
    %c0_i32 = arith.constant 0 : i32
    %71 = vector.broadcast %c0_i32 : i32 to vector<2x1xi32>
    %72 = arith.cmpi sgt, %27, %71 : vector<2x1xi32>
    %73 = vector.shape_cast %72 : vector<2x1xi1> to vector<2x1xi1>
    %74 = vector.broadcast %73 : vector<2x1xi1> to vector<2x32xi1>
    %75 = arith.select %74, %70, %42 : vector<2x32xi1>, vector<2x32xf32>
    %76 = arith.truncf %75 : vector<2x32xf32> to vector<2x32xbf16>
    %cst_24 = arith.constant dense<0.000000e+00> : vector<2x96xf32>
    %77 = tpu.matmul %76, %40, %cst_24 {dimension_numbers = #tpu.dot_dimension_numbers<[1], [0], [0], [1], [0, 0, 1, 1], [], []>} : vector<2x32xbf16>, vector<32x96xbf16>, vector<2x96xf32> -> vector<2x96xf32>
    %78 = vector.broadcast %41 : vector<1x96xf32> to vector<2x96xf32>
    %79 = arith.addf %77, %78 : vector<2x96xf32>
    %80 = vector.extract_strided_slice %39 {offsets = [2, 0], sizes = [2, 96], strides = [1, 1]} : vector<16x96xf32> to vector<2x96xf32>
    %81 = arith.addf %80, %79 : vector<2x96xf32>
    %82 = vector.extract_strided_slice %81 {offsets = [0, 0], sizes = [2, 32], strides = [1, 1]} : vector<2x96xf32> to vector<2x32xf32>
    %83 = arith.negf %82 : vector<2x32xf32>
    %84 = math.exp %83 : vector<2x32xf32>
    %cst_25 = arith.constant 1.000000e+00 : f32
    %85 = vector.broadcast %cst_25 : f32 to vector<2x32xf32>
    %86 = arith.addf %85, %84 : vector<2x32xf32>
    %87 = arith.divf %85, %86 : vector<2x32xf32>
    %88 = vector.extract_strided_slice %81 {offsets = [0, 32], sizes = [2, 32], strides = [1, 1]} : vector<2x96xf32> to vector<2x32xf32>
    %89 = arith.negf %88 : vector<2x32xf32>
    %90 = math.exp %89 : vector<2x32xf32>
    %cst_26 = arith.constant 1.000000e+00 : f32
    %91 = vector.broadcast %cst_26 : f32 to vector<2x32xf32>
    %92 = arith.addf %91, %90 : vector<2x32xf32>
    %93 = arith.divf %91, %92 : vector<2x32xf32>
    %94 = vector.extract_strided_slice %80 {offsets = [0, 64], sizes = [2, 32], strides = [1, 1]} : vector<2x96xf32> to vector<2x32xf32>
    %95 = vector.extract_strided_slice %79 {offsets = [0, 64], sizes = [2, 32], strides = [1, 1]} : vector<2x96xf32> to vector<2x32xf32>
    %96 = arith.mulf %87, %95 : vector<2x32xf32>
    %97 = arith.addf %94, %96 : vector<2x32xf32>
    %98 = math.tanh %97 : vector<2x32xf32>
    %cst_27 = arith.constant 1.000000e+00 : f32
    %99 = vector.broadcast %cst_27 : f32 to vector<2x32xf32>
    %100 = arith.subf %99, %93 : vector<2x32xf32>
    %101 = arith.mulf %100, %98 : vector<2x32xf32>
    %102 = arith.mulf %93, %75 : vector<2x32xf32>
    %103 = arith.addf %101, %102 : vector<2x32xf32>
    %c1_i32 = arith.constant 1 : i32
    %104 = vector.broadcast %c1_i32 : i32 to vector<2x1xi32>
    %105 = arith.cmpi sgt, %27, %104 : vector<2x1xi32>
    %106 = vector.shape_cast %105 : vector<2x1xi1> to vector<2x1xi1>
    %107 = vector.broadcast %106 : vector<2x1xi1> to vector<2x32xi1>
    %108 = arith.select %107, %103, %75 : vector<2x32xi1>, vector<2x32xf32>
    %109 = arith.truncf %108 : vector<2x32xf32> to vector<2x32xbf16>
    %cst_28 = arith.constant dense<0.000000e+00> : vector<2x96xf32>
    %110 = tpu.matmul %109, %40, %cst_28 {dimension_numbers = #tpu.dot_dimension_numbers<[1], [0], [0], [1], [0, 0, 1, 1], [], []>} : vector<2x32xbf16>, vector<32x96xbf16>, vector<2x96xf32> -> vector<2x96xf32>
    %111 = vector.broadcast %41 : vector<1x96xf32> to vector<2x96xf32>
    %112 = arith.addf %110, %111 : vector<2x96xf32>
    %113 = vector.extract_strided_slice %39 {offsets = [4, 0], sizes = [2, 96], strides = [1, 1]} : vector<16x96xf32> to vector<2x96xf32>
    %114 = arith.addf %113, %112 : vector<2x96xf32>
    %115 = vector.extract_strided_slice %114 {offsets = [0, 0], sizes = [2, 32], strides = [1, 1]} : vector<2x96xf32> to vector<2x32xf32>
    %116 = arith.negf %115 : vector<2x32xf32>
    %117 = math.exp %116 : vector<2x32xf32>
    %cst_29 = arith.constant 1.000000e+00 : f32
    %118 = vector.broadcast %cst_29 : f32 to vector<2x32xf32>
    %119 = arith.addf %118, %117 : vector<2x32xf32>
    %120 = arith.divf %118, %119 : vector<2x32xf32>
    %121 = vector.extract_strided_slice %114 {offsets = [0, 32], sizes = [2, 32], strides = [1, 1]} : vector<2x96xf32> to vector<2x32xf32>
    %122 = arith.negf %121 : vector<2x32xf32>
    %123 = math.exp %122 : vector<2x32xf32>
    %cst_30 = arith.constant 1.000000e+00 : f32
    %124 = vector.broadcast %cst_30 : f32 to vector<2x32xf32>
    %125 = arith.addf %124, %123 : vector<2x32xf32>
    %126 = arith.divf %124, %125 : vector<2x32xf32>
    %127 = vector.extract_strided_slice %113 {offsets = [0, 64], sizes = [2, 32], strides = [1, 1]} : vector<2x96xf32> to vector<2x32xf32>
    %128 = vector.extract_strided_slice %112 {offsets = [0, 64], sizes = [2, 32], strides = [1, 1]} : vector<2x96xf32> to vector<2x32xf32>
    %129 = arith.mulf %120, %128 : vector<2x32xf32>
    %130 = arith.addf %127, %129 : vector<2x32xf32>
    %131 = math.tanh %130 : vector<2x32xf32>
    %cst_31 = arith.constant 1.000000e+00 : f32
    %132 = vector.broadcast %cst_31 : f32 to vector<2x32xf32>
    %133 = arith.subf %132, %126 : vector<2x32xf32>
    %134 = arith.mulf %133, %131 : vector<2x32xf32>
    %135 = arith.mulf %126, %108 : vector<2x32xf32>
    %136 = arith.addf %134, %135 : vector<2x32xf32>
    %c2_i32 = arith.constant 2 : i32
    %137 = vector.broadcast %c2_i32 : i32 to vector<2x1xi32>
    %138 = arith.cmpi sgt, %27, %137 : vector<2x1xi32>
    %139 = vector.shape_cast %138 : vector<2x1xi1> to vector<2x1xi1>
    %140 = vector.broadcast %139 : vector<2x1xi1> to vector<2x32xi1>
    %141 = arith.select %140, %136, %108 : vector<2x32xi1>, vector<2x32xf32>
    %142 = arith.truncf %141 : vector<2x32xf32> to vector<2x32xbf16>
    %cst_32 = arith.constant dense<0.000000e+00> : vector<2x96xf32>
    %143 = tpu.matmul %142, %40, %cst_32 {dimension_numbers = #tpu.dot_dimension_numbers<[1], [0], [0], [1], [0, 0, 1, 1], [], []>} : vector<2x32xbf16>, vector<32x96xbf16>, vector<2x96xf32> -> vector<2x96xf32>
    %144 = vector.broadcast %41 : vector<1x96xf32> to vector<2x96xf32>
    %145 = arith.addf %143, %144 : vector<2x96xf32>
    %146 = vector.extract_strided_slice %39 {offsets = [6, 0], sizes = [2, 96], strides = [1, 1]} : vector<16x96xf32> to vector<2x96xf32>
    %147 = arith.addf %146, %145 : vector<2x96xf32>
    %148 = vector.extract_strided_slice %147 {offsets = [0, 0], sizes = [2, 32], strides = [1, 1]} : vector<2x96xf32> to vector<2x32xf32>
    %149 = arith.negf %148 : vector<2x32xf32>
    %150 = math.exp %149 : vector<2x32xf32>
    %cst_33 = arith.constant 1.000000e+00 : f32
    %151 = vector.broadcast %cst_33 : f32 to vector<2x32xf32>
    %152 = arith.addf %151, %150 : vector<2x32xf32>
    %153 = arith.divf %151, %152 : vector<2x32xf32>
    %154 = vector.extract_strided_slice %147 {offsets = [0, 32], sizes = [2, 32], strides = [1, 1]} : vector<2x96xf32> to vector<2x32xf32>
    %155 = arith.negf %154 : vector<2x32xf32>
    %156 = math.exp %155 : vector<2x32xf32>
    %cst_34 = arith.constant 1.000000e+00 : f32
    %157 = vector.broadcast %cst_34 : f32 to vector<2x32xf32>
    %158 = arith.addf %157, %156 : vector<2x32xf32>
    %159 = arith.divf %157, %158 : vector<2x32xf32>
    %160 = vector.extract_strided_slice %146 {offsets = [0, 64], sizes = [2, 32], strides = [1, 1]} : vector<2x96xf32> to vector<2x32xf32>
    %161 = vector.extract_strided_slice %145 {offsets = [0, 64], sizes = [2, 32], strides = [1, 1]} : vector<2x96xf32> to vector<2x32xf32>
    %162 = arith.mulf %153, %161 : vector<2x32xf32>
    %163 = arith.addf %160, %162 : vector<2x32xf32>
    %164 = math.tanh %163 : vector<2x32xf32>
    %cst_35 = arith.constant 1.000000e+00 : f32
    %165 = vector.broadcast %cst_35 : f32 to vector<2x32xf32>
    %166 = arith.subf %165, %159 : vector<2x32xf32>
    %167 = arith.mulf %166, %164 : vector<2x32xf32>
    %168 = arith.mulf %159, %141 : vector<2x32xf32>
    %169 = arith.addf %167, %168 : vector<2x32xf32>
    %c3_i32 = arith.constant 3 : i32
    %170 = vector.broadcast %c3_i32 : i32 to vector<2x1xi32>
    %171 = arith.cmpi sgt, %27, %170 : vector<2x1xi32>
    %172 = vector.shape_cast %171 : vector<2x1xi1> to vector<2x1xi1>
    %173 = vector.broadcast %172 : vector<2x1xi1> to vector<2x32xi1>
    %174 = arith.select %173, %169, %141 : vector<2x32xi1>, vector<2x32xf32>
    %175 = arith.truncf %174 : vector<2x32xf32> to vector<2x32xbf16>
    %cst_36 = arith.constant dense<0.000000e+00> : vector<2x96xf32>
    %176 = tpu.matmul %175, %40, %cst_36 {dimension_numbers = #tpu.dot_dimension_numbers<[1], [0], [0], [1], [0, 0, 1, 1], [], []>} : vector<2x32xbf16>, vector<32x96xbf16>, vector<2x96xf32> -> vector<2x96xf32>
    %177 = vector.broadcast %41 : vector<1x96xf32> to vector<2x96xf32>
    %178 = arith.addf %176, %177 : vector<2x96xf32>
    %179 = vector.extract_strided_slice %39 {offsets = [8, 0], sizes = [2, 96], strides = [1, 1]} : vector<16x96xf32> to vector<2x96xf32>
    %180 = arith.addf %179, %178 : vector<2x96xf32>
    %181 = vector.extract_strided_slice %180 {offsets = [0, 0], sizes = [2, 32], strides = [1, 1]} : vector<2x96xf32> to vector<2x32xf32>
    %182 = arith.negf %181 : vector<2x32xf32>
    %183 = math.exp %182 : vector<2x32xf32>
    %cst_37 = arith.constant 1.000000e+00 : f32
    %184 = vector.broadcast %cst_37 : f32 to vector<2x32xf32>
    %185 = arith.addf %184, %183 : vector<2x32xf32>
    %186 = arith.divf %184, %185 : vector<2x32xf32>
    %187 = vector.extract_strided_slice %180 {offsets = [0, 32], sizes = [2, 32], strides = [1, 1]} : vector<2x96xf32> to vector<2x32xf32>
    %188 = arith.negf %187 : vector<2x32xf32>
    %189 = math.exp %188 : vector<2x32xf32>
    %cst_38 = arith.constant 1.000000e+00 : f32
    %190 = vector.broadcast %cst_38 : f32 to vector<2x32xf32>
    %191 = arith.addf %190, %189 : vector<2x32xf32>
    %192 = arith.divf %190, %191 : vector<2x32xf32>
    %193 = vector.extract_strided_slice %179 {offsets = [0, 64], sizes = [2, 32], strides = [1, 1]} : vector<2x96xf32> to vector<2x32xf32>
    %194 = vector.extract_strided_slice %178 {offsets = [0, 64], sizes = [2, 32], strides = [1, 1]} : vector<2x96xf32> to vector<2x32xf32>
    %195 = arith.mulf %186, %194 : vector<2x32xf32>
    %196 = arith.addf %193, %195 : vector<2x32xf32>
    %197 = math.tanh %196 : vector<2x32xf32>
    %cst_39 = arith.constant 1.000000e+00 : f32
    %198 = vector.broadcast %cst_39 : f32 to vector<2x32xf32>
    %199 = arith.subf %198, %192 : vector<2x32xf32>
    %200 = arith.mulf %199, %197 : vector<2x32xf32>
    %201 = arith.mulf %192, %174 : vector<2x32xf32>
    %202 = arith.addf %200, %201 : vector<2x32xf32>
    %c4_i32 = arith.constant 4 : i32
    %203 = vector.broadcast %c4_i32 : i32 to vector<2x1xi32>
    %204 = arith.cmpi sgt, %27, %203 : vector<2x1xi32>
    %205 = vector.shape_cast %204 : vector<2x1xi1> to vector<2x1xi1>
    %206 = vector.broadcast %205 : vector<2x1xi1> to vector<2x32xi1>
    %207 = arith.select %206, %202, %174 : vector<2x32xi1>, vector<2x32xf32>
    %208 = arith.truncf %207 : vector<2x32xf32> to vector<2x32xbf16>
    %cst_40 = arith.constant dense<0.000000e+00> : vector<2x96xf32>
    %209 = tpu.matmul %208, %40, %cst_40 {dimension_numbers = #tpu.dot_dimension_numbers<[1], [0], [0], [1], [0, 0, 1, 1], [], []>} : vector<2x32xbf16>, vector<32x96xbf16>, vector<2x96xf32> -> vector<2x96xf32>
    %210 = vector.broadcast %41 : vector<1x96xf32> to vector<2x96xf32>
    %211 = arith.addf %209, %210 : vector<2x96xf32>
    %212 = vector.extract_strided_slice %39 {offsets = [10, 0], sizes = [2, 96], strides = [1, 1]} : vector<16x96xf32> to vector<2x96xf32>
    %213 = arith.addf %212, %211 : vector<2x96xf32>
    %214 = vector.extract_strided_slice %213 {offsets = [0, 0], sizes = [2, 32], strides = [1, 1]} : vector<2x96xf32> to vector<2x32xf32>
    %215 = arith.negf %214 : vector<2x32xf32>
    %216 = math.exp %215 : vector<2x32xf32>
    %cst_41 = arith.constant 1.000000e+00 : f32
    %217 = vector.broadcast %cst_41 : f32 to vector<2x32xf32>
    %218 = arith.addf %217, %216 : vector<2x32xf32>
    %219 = arith.divf %217, %218 : vector<2x32xf32>
    %220 = vector.extract_strided_slice %213 {offsets = [0, 32], sizes = [2, 32], strides = [1, 1]} : vector<2x96xf32> to vector<2x32xf32>
    %221 = arith.negf %220 : vector<2x32xf32>
    %222 = math.exp %221 : vector<2x32xf32>
    %cst_42 = arith.constant 1.000000e+00 : f32
    %223 = vector.broadcast %cst_42 : f32 to vector<2x32xf32>
    %224 = arith.addf %223, %222 : vector<2x32xf32>
    %225 = arith.divf %223, %224 : vector<2x32xf32>
    %226 = vector.extract_strided_slice %212 {offsets = [0, 64], sizes = [2, 32], strides = [1, 1]} : vector<2x96xf32> to vector<2x32xf32>
    %227 = vector.extract_strided_slice %211 {offsets = [0, 64], sizes = [2, 32], strides = [1, 1]} : vector<2x96xf32> to vector<2x32xf32>
    %228 = arith.mulf %219, %227 : vector<2x32xf32>
    %229 = arith.addf %226, %228 : vector<2x32xf32>
    %230 = math.tanh %229 : vector<2x32xf32>
    %cst_43 = arith.constant 1.000000e+00 : f32
    %231 = vector.broadcast %cst_43 : f32 to vector<2x32xf32>
    %232 = arith.subf %231, %225 : vector<2x32xf32>
    %233 = arith.mulf %232, %230 : vector<2x32xf32>
    %234 = arith.mulf %225, %207 : vector<2x32xf32>
    %235 = arith.addf %233, %234 : vector<2x32xf32>
    %c5_i32 = arith.constant 5 : i32
    %236 = vector.broadcast %c5_i32 : i32 to vector<2x1xi32>
    %237 = arith.cmpi sgt, %27, %236 : vector<2x1xi32>
    %238 = vector.shape_cast %237 : vector<2x1xi1> to vector<2x1xi1>
    %239 = vector.broadcast %238 : vector<2x1xi1> to vector<2x32xi1>
    %240 = arith.select %239, %235, %207 : vector<2x32xi1>, vector<2x32xf32>
    %241 = arith.truncf %240 : vector<2x32xf32> to vector<2x32xbf16>
    %cst_44 = arith.constant dense<0.000000e+00> : vector<2x96xf32>
    %242 = tpu.matmul %241, %40, %cst_44 {dimension_numbers = #tpu.dot_dimension_numbers<[1], [0], [0], [1], [0, 0, 1, 1], [], []>} : vector<2x32xbf16>, vector<32x96xbf16>, vector<2x96xf32> -> vector<2x96xf32>
    %243 = vector.broadcast %41 : vector<1x96xf32> to vector<2x96xf32>
    %244 = arith.addf %242, %243 : vector<2x96xf32>
    %245 = vector.extract_strided_slice %39 {offsets = [12, 0], sizes = [2, 96], strides = [1, 1]} : vector<16x96xf32> to vector<2x96xf32>
    %246 = arith.addf %245, %244 : vector<2x96xf32>
    %247 = vector.extract_strided_slice %246 {offsets = [0, 0], sizes = [2, 32], strides = [1, 1]} : vector<2x96xf32> to vector<2x32xf32>
    %248 = arith.negf %247 : vector<2x32xf32>
    %249 = math.exp %248 : vector<2x32xf32>
    %cst_45 = arith.constant 1.000000e+00 : f32
    %250 = vector.broadcast %cst_45 : f32 to vector<2x32xf32>
    %251 = arith.addf %250, %249 : vector<2x32xf32>
    %252 = arith.divf %250, %251 : vector<2x32xf32>
    %253 = vector.extract_strided_slice %246 {offsets = [0, 32], sizes = [2, 32], strides = [1, 1]} : vector<2x96xf32> to vector<2x32xf32>
    %254 = arith.negf %253 : vector<2x32xf32>
    %255 = math.exp %254 : vector<2x32xf32>
    %cst_46 = arith.constant 1.000000e+00 : f32
    %256 = vector.broadcast %cst_46 : f32 to vector<2x32xf32>
    %257 = arith.addf %256, %255 : vector<2x32xf32>
    %258 = arith.divf %256, %257 : vector<2x32xf32>
    %259 = vector.extract_strided_slice %245 {offsets = [0, 64], sizes = [2, 32], strides = [1, 1]} : vector<2x96xf32> to vector<2x32xf32>
    %260 = vector.extract_strided_slice %244 {offsets = [0, 64], sizes = [2, 32], strides = [1, 1]} : vector<2x96xf32> to vector<2x32xf32>
    %261 = arith.mulf %252, %260 : vector<2x32xf32>
    %262 = arith.addf %259, %261 : vector<2x32xf32>
    %263 = math.tanh %262 : vector<2x32xf32>
    %cst_47 = arith.constant 1.000000e+00 : f32
    %264 = vector.broadcast %cst_47 : f32 to vector<2x32xf32>
    %265 = arith.subf %264, %258 : vector<2x32xf32>
    %266 = arith.mulf %265, %263 : vector<2x32xf32>
    %267 = arith.mulf %258, %240 : vector<2x32xf32>
    %268 = arith.addf %266, %267 : vector<2x32xf32>
    %c6_i32 = arith.constant 6 : i32
    %269 = vector.broadcast %c6_i32 : i32 to vector<2x1xi32>
    %270 = arith.cmpi sgt, %27, %269 : vector<2x1xi32>
    %271 = vector.shape_cast %270 : vector<2x1xi1> to vector<2x1xi1>
    %272 = vector.broadcast %271 : vector<2x1xi1> to vector<2x32xi1>
    %273 = arith.select %272, %268, %240 : vector<2x32xi1>, vector<2x32xf32>
    %274 = arith.truncf %273 : vector<2x32xf32> to vector<2x32xbf16>
    %cst_48 = arith.constant dense<0.000000e+00> : vector<2x96xf32>
    %275 = tpu.matmul %274, %40, %cst_48 {dimension_numbers = #tpu.dot_dimension_numbers<[1], [0], [0], [1], [0, 0, 1, 1], [], []>} : vector<2x32xbf16>, vector<32x96xbf16>, vector<2x96xf32> -> vector<2x96xf32>
    %276 = vector.broadcast %41 : vector<1x96xf32> to vector<2x96xf32>
    %277 = arith.addf %275, %276 : vector<2x96xf32>
    %278 = vector.extract_strided_slice %39 {offsets = [14, 0], sizes = [2, 96], strides = [1, 1]} : vector<16x96xf32> to vector<2x96xf32>
    %279 = arith.addf %278, %277 : vector<2x96xf32>
    %280 = vector.extract_strided_slice %279 {offsets = [0, 0], sizes = [2, 32], strides = [1, 1]} : vector<2x96xf32> to vector<2x32xf32>
    %281 = arith.negf %280 : vector<2x32xf32>
    %282 = math.exp %281 : vector<2x32xf32>
    %cst_49 = arith.constant 1.000000e+00 : f32
    %283 = vector.broadcast %cst_49 : f32 to vector<2x32xf32>
    %284 = arith.addf %283, %282 : vector<2x32xf32>
    %285 = arith.divf %283, %284 : vector<2x32xf32>
    %286 = vector.extract_strided_slice %279 {offsets = [0, 32], sizes = [2, 32], strides = [1, 1]} : vector<2x96xf32> to vector<2x32xf32>
    %287 = arith.negf %286 : vector<2x32xf32>
    %288 = math.exp %287 : vector<2x32xf32>
    %cst_50 = arith.constant 1.000000e+00 : f32
    %289 = vector.broadcast %cst_50 : f32 to vector<2x32xf32>
    %290 = arith.addf %289, %288 : vector<2x32xf32>
    %291 = arith.divf %289, %290 : vector<2x32xf32>
    %292 = vector.extract_strided_slice %278 {offsets = [0, 64], sizes = [2, 32], strides = [1, 1]} : vector<2x96xf32> to vector<2x32xf32>
    %293 = vector.extract_strided_slice %277 {offsets = [0, 64], sizes = [2, 32], strides = [1, 1]} : vector<2x96xf32> to vector<2x32xf32>
    %294 = arith.mulf %285, %293 : vector<2x32xf32>
    %295 = arith.addf %292, %294 : vector<2x32xf32>
    %296 = math.tanh %295 : vector<2x32xf32>
    %cst_51 = arith.constant 1.000000e+00 : f32
    %297 = vector.broadcast %cst_51 : f32 to vector<2x32xf32>
    %298 = arith.subf %297, %291 : vector<2x32xf32>
    %299 = arith.mulf %298, %296 : vector<2x32xf32>
    %300 = arith.mulf %291, %273 : vector<2x32xf32>
    %301 = arith.addf %299, %300 : vector<2x32xf32>
    %c7_i32 = arith.constant 7 : i32
    %302 = vector.broadcast %c7_i32 : i32 to vector<2x1xi32>
    %303 = arith.cmpi sgt, %27, %302 : vector<2x1xi32>
    %304 = vector.shape_cast %303 : vector<2x1xi1> to vector<2x1xi1>
    %305 = vector.broadcast %304 : vector<2x1xi1> to vector<2x32xi1>
    %306 = arith.select %305, %301, %273 : vector<2x32xi1>, vector<2x32xf32>
    %307 = vector.extract_strided_slice %24 {offsets = [0, 0], sizes = [2, 32], strides = [1, 1]} : vector<8x32xf32> to vector<2x32xf32>
    %308 = vector.extract_strided_slice %24 {offsets = [2, 0], sizes = [2, 32], strides = [1, 1]} : vector<8x32xf32> to vector<2x32xf32>
    %309 = vector.extract_strided_slice %24 {offsets = [4, 0], sizes = [2, 32], strides = [1, 1]} : vector<8x32xf32> to vector<2x32xf32>
    %310 = vector.extract_strided_slice %24 {offsets = [6, 0], sizes = [2, 32], strides = [1, 1]} : vector<8x32xf32> to vector<2x32xf32>
    %311 = tpu.concatenate %307, %308, %309, %310 in 1 : vector<2x32xf32>, vector<2x32xf32>, vector<2x32xf32>, vector<2x32xf32> -> vector<2x128xf32>
    %312 = arith.truncf %311 : vector<2x128xf32> to vector<2x128xbf16>
    %c440 = arith.constant 440 : index
    %c0_52 = arith.constant 0 : index
    %313 = vector.load %arg1[%c440, %c0_52] : memref<600x128xbf16, #tpu.memory_space<vmem>>, vector<128x32xbf16>
    %cst_53 = arith.constant dense<0.000000e+00> : vector<2x32xf32>
    %314 = tpu.matmul %312, %313, %cst_53 {dimension_numbers = #tpu.dot_dimension_numbers<[1], [0], [0], [1], [0, 0, 1, 1], [], []>} : vector<2x128xbf16>, vector<128x32xbf16>, vector<2x32xf32> -> vector<2x32xf32>
    %315 = arith.truncf %306 : vector<2x32xf32> to vector<2x32xbf16>
    %c568 = arith.constant 568 : index
    %c0_54 = arith.constant 0 : index
    %316 = vector.load %arg1[%c568, %c0_54] : memref<600x128xbf16, #tpu.memory_space<vmem>>, vector<32x32xbf16>
    %cst_55 = arith.constant dense<0.000000e+00> : vector<2x32xf32>
    %317 = tpu.matmul %315, %316, %cst_55 {dimension_numbers = #tpu.dot_dimension_numbers<[1], [0], [0], [1], [0, 0, 1, 1], [], []>} : vector<2x32xbf16>, vector<32x32xbf16>, vector<2x32xf32> -> vector<2x32xf32>
    %318 = arith.addf %314, %317 : vector<2x32xf32>
    %319 = vector.extract_strided_slice %0 {offsets = [5, 0], sizes = [1, 32], strides = [1, 1]} : vector<8x128xf32> to vector<1x32xf32>
    %320 = vector.broadcast %319 : vector<1x32xf32> to vector<2x32xf32>
    %321 = arith.addf %318, %320 : vector<2x32xf32>
    %c0_56 = arith.constant 0 : index
    %c0_57 = arith.constant 0 : index
    %322 = vector.load %arg4[%c0_56, %c0_57] : memref<2x32xf32, #tpu.memory_space<vmem>>, vector<2x32xf32>
    tpu.vector_store %arg4[%c0_56, %c0_57], %321 {strides = array<i32>} : memref<2x32xf32, #tpu.memory_space<vmem>>, vector<2x32xf32>,
    return
  }
}

</mosaic_0001>

<bundles_post_ra>
// kernel: image_text_encoder_forward.1
= control target key start
LH: loop header
LB: loop body
LE: loop exit
PB: predicated region body
PF: predicated region fallthrough
CT: control target
= control target key end

     0   :  { %v1701_v0 = vmov 0   ;;  %v1702_v2 = vmov 0.0   ;;  %vm126_vm0 = vcmask 523264   ;;  %vm1703_vm1 = vmmov 0   ;;  %s1704_s25 = smov 64   ;;  %s1705_s26 = smov 96   ;;  %s2093_s1 = inlined_call_operand.vmem [shape: bf16[600,128], index: 1, kind: input, shape index: {}]   ;;  %s2094_s0 = inlined_call_operand.vmem [shape: bf16[8,192], index: 0, kind: input, shape index: {}]   ;;  %s2095_s3 = inlined_call_operand.vmem [shape: s32[18,1], index: 3, kind: input, shape index: {}]   ;;  %s2096_s2 = inlined_call_operand.vmem [shape: f32[8,128], index: 2, kind: input, shape index: {}]   ;;  %s2097_s4 = inlined_call_operand.vmem [shape: f32[2,32], index: 4, kind: output, shape index: {}]  }
   0x1   :  { %130 = vmatprep.subr.bf16.mxu0 %v1701_v0  ;;  %v1613_v1 = vld [vmem:[%s2093_s1] sm:$0xff]   ;;  %1468 = vmatprep.subr.bf16.mxu1 %v1702_v2  ;;  %v1614_v3 = vld [vmem:[%s2093_s1 + $0x8] sm:$0xff]   ;;  %v1615_v4 = vld [vmem:[%s2093_s1 + $0x10] sm:$0xff]   ;;  %v44_v29 = vlaneseq  ;;  %vm398_vm3 = vcmask 1043456   ;;  %vm394_vm6 = vcmask 195584   ;;  %vm463_vm8 = vcmask 261120  }
   0x2   :  { %1606 = vset.pattern.permute.xlu0 %v1701_v0  ;;  %1607 = vset.pattern.permute.xlu1 %v1701_v0  ;;  %v1616_v5 = vld [vmem:[%s2093_s1 + $0x18] sm:$0xff]   ;;  %v19_v6 = vld [vmem:[%s2094_s0] sm:$0xff]  ;;  %v1628_v10 = vld [vmem:[%s2093_s1 + $0x68] sm:$0xff]   ;;  %s1706_s27 = smov 32  }
   0x3   :  { %131 = vmatpush1.bf16.msra.mxu0 %v1613_v1  ;;  %v1357_v7 = vcombine.high %v19_v6, %v19_v6  ;;  %v1627_v8 = vld [vmem:[%s2093_s1 + $0x60] sm:$0xff]   ;;  %v1618_v11 = vld [vmem:[%s2093_s1 + $0x28] sm:$0xff]   ;;  %v1629_v12 = vld [vmem:[%s2093_s1 + $0x70] sm:$0xff]   ;;  %v1356_v22 = vcombine.low %v19_v6, %v19_v6  ;;  %1484 = vmatprep.mubr.msk.bf16.mxu1 %vm1703_vm1, %v1702_v2  ;;  %v1837_v30 = vshrl.u32 %v44_v29, 7  ;;  %v366_v54 = vand.u32 127, %v44_v29 }
   0x4   :  { %132 = vmatprep.subr.bf16.mxu0 %v1701_v0  ;;  %v1617_v9 = vld [vmem:[%s2093_s1 + $0x20] sm:$0xff]   ;;  %1469 = vmatpush3.bf16.msra.mxu1 %v1627_v8  ;;  %v1619_v13 = vld [vmem:[%s2093_s1 + $0x30] sm:$0xff]   ;;  %v1630_v14 = vld [vmem:[%s2093_s1 + $0x78] sm:$0xff]  }
   0x5   :  { %1370 = vmatprep.mubr.msk.bf16.mxu0 %vm126_vm0, %v1357_v7  ;;  %1470 = vmatprep.subr.bf16.mxu1 %v1702_v2  ;;  %v1620_v15 = vld [vmem:[%s2093_s1 + $0x38] sm:$0xff]   ;;  %v1631_v16 = vld [vmem:[%s2093_s1 + $0x80] sm:$0xff]   ;;  %v1632_v18 = vld [vmem:[%s2093_s1 + $0x88] sm:$0xff]   ;;  %v46_v31 = vsub.s32 0, %v1837_v30  ;;  %v190_v47 = vsub.s32 1, %v1837_v30  ;;  %v383_v7 = vsub.s32 3, %v1837_v30 }
   0x6   :  { %v1621_v17 = vld [vmem:[%s2093_s1 + $0x40] sm:$0xff]   ;;  %v1622_v19 = vld [vmem:[%s2093_s1 + $0x48] sm:$0xff]   ;;  %v1623_v20 = vld [vmem:[%s2093_s1 + $0x50] sm:$0xff]  }
   0x7   :  { %133 = vmatpush1.bf16.msra.mxu0 %v1614_v3  ;;  %v1624_v21 = vld [vmem:[%s2093_s1 + $0x58] sm:$0xff]   ;;  %v1633_v23 = vld [vmem:[%s2093_s1 + $0x90] sm:$0xff]   ;;  %v362_v25 = vld [vmem:[%s2095_s3] sm:$0xff] }
   0x8   :  { %134 = vmatprep.subr.bf16.mxu0 %v1701_v0  ;;  %1471 = vmatpush3.bf16.msra.mxu1 %v1628_v10  ;;  %v1634_v24 = vld [vmem:[%s2093_s1 + $0x98] sm:$0xff]   ;;  %v1830_v26 = vld [vmem:[%s2095_s3 + $0x10] sm:$0x3]  ;;  %v363_v27 = vld [vmem:[%s2095_s3 + $0x8] sm:$0xff] }
   0x9   :  { %1472 = vmatprep.subr.bf16.mxu1 %v1702_v2  ;;  %368 = vperm.xlu0 %1606, %v362_v25   ;;  %vm533_vm2 = vcmp.gt.s32.totalorder %v1830_v26, 0  ;;  %v1843_v32 = vld [vmem:[%s2096_s2] sm:$0xff]  ;;  %v1636_v42 = vld [vmem:[%s2093_s1 + $0xa8] sm:$0xff]   ;;  %v1637_v43 = vld [vmem:[%s2093_s1 + $0xb0] sm:$0xff]   ;;  %vm618_vm9 = vcmp.gt.s32.totalorder %v1830_v26, 1  ;;  %vm710_vm11 = vcmp.gt.s32.totalorder %v1830_v26, 2 }
   0xa   :  { %v534_v28 = vsel %vm533_vm2, 1, %v1701_v0  ;;  %v47_v33 = vrot.slane %v1843_v32, %v46_v31  ;;  %v1635_v40 = vld [vmem:[%s2093_s1 + $0xa0] sm:$0xff]   ;;  %v1638_v44 = vld [vmem:[%s2093_s1 + $0xb8] sm:$0xff]   ;;  %v1867_v45 = vld [vmem:[%s2093_s1 + $0xcc] sm:$0xff]   ;;  %v191_v48 = vrot.slane %v1843_v32, %v190_v47  ;;  %v384_v10 = vrot.slane %v1843_v32, %v383_v7 }
   0xb   :  { %135 = vmatpush1.bf16.msra.mxu0 %v1615_v4  ;;  %v1874_v46 = vld [vmem:[%s2093_s1 + $0xd4] sm:$0xff]   ;;  %v1639_v57 = vld [vmem:[%s2093_s1 + $0xc0] sm:$0xff]   ;;  %v1640_v59 = vld [vmem:[%s2093_s1 + $0xc8] ss:$0 sps:$4 sm:$0xff]   ;;  %vm799_vm13 = vcmp.gt.s32.totalorder %v1830_v26, 3  ;;  %vm885_vm15 = vcmp.gt.s32.totalorder %v1830_v26, 4 }
   0xc   :  { %136 = vmatprep.subr.bf16.mxu0 %v1701_v0  ;;  %1473 = vmatpush3.bf16.msra.mxu1 %v1629_v12  ;;  %v400_v61 = vsel %vm398_vm3, %v1640_v59, 0  ;;  %v619_v59 = vsel %vm618_vm9, 1, %v1701_v0  ;;  %vm970_vm3 = vcmp.gt.s32.totalorder %v1830_v26, 5 }
   0xd   :  { %1474 = vmatprep.subr.bf16.mxu1 %v1702_v2  ;;  %371 = vperm.xlu0 %1606, %v363_v27  }
   0xf   :  { %137 = vmatpush1.bf16.msra.mxu0 %v1616_v5 }
  0x10   :  { %138 = vmatprep.subr.bf16.mxu0 %v1701_v0  ;;  %1475 = vmatpush3.bf16.msra.mxu1 %v1630_v14 }
  0x11   :  { %1476 = vmatprep.subr.bf16.mxu1 %v1702_v2  ;;  %536 = vperm.xlu0 %1606, %v534_v28  }
  0x13   :  { %139 = vmatpush1.bf16.msra.mxu0 %v1617_v9  ;;  %v449_v9 = vsub.s32 4, %v1837_v30 }
  0x14   :  { %140 = vmatprep.subr.bf16.mxu0 %v1701_v0  ;;  %1477 = vmatpush3.bf16.msra.mxu1 %v1631_v16 }
  0x15   :  { %1478 = vmatprep.subr.bf16.mxu1 %v1702_v2 }
  0x17   :  { %141 = vmatpush1.bf16.msra.mxu0 %v1618_v11 }
  0x18   :  { %142 = vmatprep.subr.bf16.mxu0 %v1701_v0  ;;  %1479 = vmatpush3.bf16.msra.mxu1 %v1632_v18 }
  0x19   :  { %1480 = vmatprep.subr.bf16.mxu1 %v1702_v2 }
  0x1b   :  { %143 = vmatpush1.bf16.msra.mxu0 %v1619_v13 }
  0x1c   :  { %144 = vmatprep.subr.bf16.mxu0 %v1701_v0  ;;  %1481 = vmatpush3.bf16.msra.mxu1 %v1633_v23 }
  0x1d   :  { %1482 = vmatprep.subr.bf16.mxu1 %v1702_v2 }
  0x1f   :  { %145 = vmatpush1.bf16.msra.mxu0 %v1620_v15  ;;  %v1914_v15 = vrot.slane %v1843_v32, %v449_v9 }
  0x20   :  { %146 = vmatprep.subr.bf16.mxu0 %v1701_v0  ;;  %1483 = vmatpush3.bf16.msra.mxu1 %v1634_v24 }
  0x21   :  { %1488 = vmatprep.subr.bf16.mxu1 %v1702_v2 }
  0x23   :  { %147 = vmatpush1.bf16.msra.mxu0 %v1621_v17 }
  0x24   :  { %148 = vmatprep.subr.bf16.mxu0 %v1701_v0 }
  0x27   :  { %149 = vmatpush1.bf16.msra.mxu0 %v1622_v19 }
  0x28   :  { %150 = vmatprep.subr.bf16.mxu0 %v1701_v0 }
  0x2b   :  { %151 = vmatpush1.bf16.msra.mxu0 %v1623_v20 }
  0x2c   :  { %152 = vmatprep.subr.bf16.mxu0 %v1701_v0 }
  0x2f   :  { %153 = vmatpush1.bf16.msra.mxu0 %v1624_v21 }
  0x30   :  { %1532 = vmatprep.subr.bf16.mxu0 %v1702_v2 }
  0x32   :  { %163 = vmatmul.mubr.bf16.vlgmr.msra.gmra.mrb[0].mxu0 %v1356_v22 }
  0x33   :  { %1536 = vmatprep.mubr.msk.bf16.mxu0 %vm1703_vm1, %v1702_v2  ;;  %1533 = vmatpush3.bf16.msra.mxu0 %v1867_v45 }
  0x34   :  { %1534 = vmatprep.subr.bf16.mxu0 %v1702_v2 }
  0x37   :  { %1535 = vmatpush3.bf16.msra.mxu0 %v1874_v46 }
  0x38   :  { %1548 = vmatprep.subr.bf16.mxu0 %v1702_v2 }
  0x88   :  { %v369_v49 = vpop.permute.xlu0 %368 }
  0x89   :  { %vm373_vm4 = vcmp.eq.s32.totalorder %v369_v49, %v366_v54 }
  0x8a   :  { %v375_v62 = vsel %vm373_vm4, 1.0, %v1702_v2 }
  0x8c   :  { %v372_v60 = vpop.permute.xlu0 %371 }
  0x8d   :  { %vm374_vm5 = vcmp.eq.s32.totalorder %v372_v60, %v366_v54 }
  0x8e   :  { %v376_v63 = vsel %vm374_vm5, 1.0, %v1702_v2  ;;  %vm1062_vm5 = vcmp.gt.s32.totalorder %v1830_v26, 6 }
  0x8f   :  { %v377_v1 = vpack.c.bf16 %v376_v63, %v375_v62 }
 0x105   :  { %v164_v34 = vpop.f32.mrb[0].mxu0 }
 0x106   :  { %v165_v35 = vadd.f32 %v164_v34, %v47_v33  ;;  %v166_v36 = vpop.f32.mrb[1].mxu0 }
 0x107   :  { %v167_v37 = vpop.f32.mrb[2].mxu0 }
 0x108   :  { %v170_v38 = vmax.f32 %v165_v35, 0.0  ;;  %v168_v39 = vpop.f32.mrb[3].mxu0  ;;  %v537_v37 = vpop.permute.xlu0 %536 }
 0x109   :  { %vm538_vm7 = vcmp.eq.s32.totalorder %v537_v37, 1  ;;  %v711_v37 = vsel %vm710_vm11, 1, %v1701_v0 }
 0x10a   :  { %v171_v41 = vpack.c.bf16 %v170_v38, %v170_v38 }
 0x10c   :  { %1485 = vmatmul.mubr.bf16.vlgmr.msra.gmra.mrb[0].mxu1 %v171_v41 }
 0x10d   :  { %1489 = vmatpush3.bf16.msra.mxu1 %v1635_v40  ;;  %1496 = vmatprep.mubr.msk.bf16.mxu1 %vm1703_vm1, %v1702_v2 }
 0x10e   :  { %1490 = vmatprep.subr.bf16.mxu1 %v1702_v2 }
 0x111   :  { %1491 = vmatpush3.bf16.msra.mxu1 %v1636_v42 }
 0x112   :  { %1492 = vmatprep.subr.bf16.mxu1 %v1702_v2 }
 0x115   :  { %1493 = vmatpush3.bf16.msra.mxu1 %v1637_v43 }
 0x116   :  { %1494 = vmatprep.subr.bf16.mxu1 %v1702_v2 }
 0x119   :  { %1495 = vmatpush3.bf16.msra.mxu1 %v1638_v44 }
 0x11a   :  { %1500 = vmatprep.subr.bf16.mxu1 %v1702_v2 }
 0x1df   :  { %v274_v50 = vpop.f32.mrb[0].mxu1 }
 0x1e0   :  { %v275_v51 = vadd.f32 %v274_v50, %v191_v48  ;;  %v1486_v52 = vpop.f32.mrb[1].mxu1 }
 0x1e1   :  { %v277_v53 = vpop.f32.mrb[2].mxu1 }
 0x1e2   :  { %v280_v55 = vmax.f32 %v275_v51, 0.0  ;;  %v1487_v56 = vpop.f32.mrb[3].mxu1 }
 0x1e4   :  { %v281_v58 = vpack.c.bf16 %v280_v55, %v280_v55 }
 0x1e6   :  { %1497 = vmatmul.mubr.msk.bf16.vlgmr.msra.gmra.mrb[4].mxu1 %vm126_vm0, %v281_v58 }
 0x1e7   :  { %1501 = vmatpush3.bf16.msra.mxu1 %v1639_v57  ;;  %1504 = vmatprep.mubr.msk.bf16.mxu1 %vm1703_vm1, %v1702_v2 }
 0x1e8   :  { %1502 = vmatprep.subr.bf16.mxu1 %v1702_v2 }
 0x1eb   :  { %1503 = vmatpush3.bf16.msra.mxu1 %v400_v61 }
 0x1ec   :  { %1508 = vmatprep.subr.bf16.mxu1 %v1702_v2 }
 0x1ee   :  { %1505 = vmatmul.mubr.msk.bf16.vlgmr.msra.gmra.mrb[8].mxu1 %vm394_vm6, %v377_v1 }
 0x1ef   :  { %1509 = vmatpush3.bf16.msra.mxu1 %v1867_v45  ;;  %1512 = vmatprep.mubr.msk.bf16.mxu1 %vm1703_vm1, %v1702_v2 }
 0x1f0   :  { %1510 = vmatprep.subr.bf16.mxu1 %v1702_v2 }
 0x1f3   :  { %1511 = vmatpush3.bf16.msra.mxu1 %v1874_v46 }
 0x1f4   :  { %1516 = vmatprep.subr.bf16.mxu1 %v1702_v2 }
 0x1f6   :  { %1513 = vmatmul.mubr.bf16.vlgmr.msra.gmra.mrb[12].mxu1 %v1701_v0 }
 0x1f7   :  { %1517 = vmatpush3.bf16.msra.mxu1 %v1867_v45  ;;  %1520 = vmatprep.mubr.msk.bf16.mxu1 %vm1703_vm1, %v1702_v2 }
 0x1f8   :  { %1518 = vmatprep.subr.bf16.mxu1 %v1702_v2 }
 0x1fb   :  { %1519 = vmatpush3.bf16.msra.mxu1 %v1874_v46 }
 0x1fc   :  { %1524 = vmatprep.subr.bf16.mxu1 %v1702_v2 }
 0x2b9   :  { %v1906_v3 = vpop.f32.mrb[4].mxu1 }
 0x2ba   :  { %v1498_v4 = vpop.f32.mrb[5].mxu1 }
 0x2bb   :  { %v358_v5 = vpop.f32.mrb[6].mxu1 }
 0x2bc   :  { %v1499_v6 = vpop.f32.mrb[7].mxu1 }
 0x2c1   :  { %v436_v8 = vpop.f32.mrb[8].mxu1 }
 0x2c2   :  { %v1506_v11 = vpop.f32.mrb[9].mxu1  ;;  %v1918_v21 = vadd.f32 %v436_v8, %v384_v10 }
 0x2c3   :  { %v439_v12 = vpop.f32.mrb[10].mxu1 }
 0x2c4   :  { %v1911_v13 = vadd.f32 %v439_v12, %v384_v10  ;;  %v1507_v14 = vpop.f32.mrb[11].mxu1 }
 0x2c9   :  { %v501_v16 = vpop.f32.mrb[12].mxu1 }
 0x2ca   :  { %v502_v17 = vadd.f32 %v501_v16, %v1914_v15  ;;  %v1514_v18 = vpop.f32.mrb[13].mxu1 }
 0x2cb   :  { %v504_v19 = vpop.f32.mrb[14].mxu1 }
 0x2cc   :  { %515 = vrot.lane.b32.xlu1 %v502_v17, %s1704_s25  ;;  %v1515_v20 = vpop.f32.mrb[15].mxu1  ;;  %v507_v22 = vadd.f32 %v502_v17, %v1918_v21 }
 0x2ce   :  { %v1389_v23 = vmul.f32 -1.442695, %v507_v22 }
 0x2d0   :  { %1653 = vpow2.f32 %v1389_v23 }
 0x2da   :  { %v1654_v24 = vpop.eup %1653 }
 0x2db   :  { %v511_v25 = vadd.f32 1.0, %v1654_v24 }
 0x2dd   :  { %1655 = vrcp.f32 %v511_v25 }
 0x2e7   :  { %v1656_v27 = vpop.eup %1655 }
 0x2e8   :  { %v525_v35 = vsub.f32 1.0, %v1656_v27  ;;  %v531_v38 = vmul.f32 0.0, %v1656_v27 }
 0x33e   :  { %v516_v28 = vpop.permute.xlu1 %515 }
 0x33f   :  { %v518_v29 = vmul.f32 %v1656_v27, %v516_v28 }
 0x341   :  { %520 = vrot.lane.b32.xlu1 %v518_v29, %s1704_s25 }
 0x3b3   :  { %v521_v31 = vpop.permute.xlu1 %520 }
 0x3b4   :  { %v523_v33 = vadd.f32 %v521_v31, %v1918_v21 }
 0x3b6   :  { %1657 = vtanh.f32 %v523_v33 }
 0x3c0   :  { %v1658_v34 = vpop.eup %1657 }
 0x3c1   :  { %527 = vrot.lane.b32.xlu1 %v1658_v34, %s1705_s26 }
 0x433   :  { %v528_v36 = vpop.permute.xlu1 %527 }
 0x434   :  { %v530_v39 = vmul.f32 %v528_v36, %v525_v35 }
 0x436   :  { %v532_v40 = vadd.f32 %v531_v38, %v530_v39 }
 0x438   :  { %v539_v41 = vsel %vm538_vm7, %v532_v40, 0.0  ;;  %vm1178_vm7 = vcmask 785408  }
 0x439   :  { %v540_v42 = vpack.c.bf16 %v539_v41, %v539_v41  ;;  %v614_v1 = vrot.slane %v539_v41, 6 }
 0x43b   :  { %542 = vrot.lane.b32.xlu0 %v540_v42, %s1705_s26 }
 0x4ad   :  { %v543_v43 = vpop.permute.xlu0 %542 }
 0x4ae   :  { %1521 = vmatmul.mubr.msk.bf16.vlgmr.msra.gmra.mrb[16].mxu1 %vm463_vm8, %v543_v43 }
 0x4af   :  { %1525 = vmatpush3.bf16.msra.mxu1 %v1867_v45  ;;  %1528 = vmatprep.mubr.msk.bf16.mxu1 %vm1703_vm1, %v1702_v2 }
 0x4b0   :  { %1526 = vmatprep.subr.bf16.mxu1 %v1702_v2 }
 0x4b3   :  { %1527 = vmatpush3.bf16.msra.mxu1 %v1874_v46 }
 0x4b4   :  { %1540 = vmatprep.subr.bf16.mxu1 %v1702_v2 }
 0x581   :  { %v581_v44 = vpop.f32.mrb[16].mxu1 }
 0x582   :  { %v582_v47 = vadd.f32 %v581_v44, %v1914_v15  ;;  %v1522_v48 = vpop.f32.mrb[17].mxu1 }
 0x583   :  { %v584_v49 = vpop.f32.mrb[18].mxu1 }
 0x584   :  { %v588_v50 = vrot.slane %v582_v47, 6  ;;  %v1523_v51 = vpop.f32.mrb[19].mxu1 }
 0x586   :  { %597 = vrot.lane.b32.xlu1 %v588_v50, %s1704_s25  ;;  %v590_v52 = vadd.f32 %v588_v50, %v1918_v21 }
 0x588   :  { %v1391_v53 = vmul.f32 -1.442695, %v590_v52 }
 0x58a   :  { %1659 = vpow2.f32 %v1391_v53 }
 0x594   :  { %v1660_v54 = vpop.eup %1659 }
 0x595   :  { %v594_v55 = vadd.f32 1.0, %v1660_v54 }
 0x597   :  { %1661 = vrcp.f32 %v594_v55 }
 0x5a1   :  { %v1662_v56 = vpop.eup %1661 }
 0x5a2   :  { %v607_v63 = vsub.f32 1.0, %v1662_v56  ;;  %v616_v5 = vmul.f32 %v1662_v56, %v614_v1 }
 0x5f8   :  { %v598_v57 = vpop.permute.xlu1 %597 }
 0x5f9   :  { %v600_v58 = vmul.f32 %v1662_v56, %v598_v57 }
 0x5fb   :  { %602 = vrot.lane.b32.xlu0 %v600_v58, %s1704_s25 }
 0x5ff   :  { %621 = vperm.xlu0 %1606, %v619_v59  }
 0x603   :  { %629 = vrot.lane.b32.xlu0 %v539_v41, %s1705_s26 }
 0x66d   :  { %v603_v60 = vpop.permute.xlu0 %602 }
 0x66e   :  { %v605_v61 = vadd.f32 %v603_v60, %v1918_v21 }
 0x670   :  { %1663 = vtanh.f32 %v605_v61 }
 0x67a   :  { %v1664_v62 = vpop.eup %1663 }
 0x67b   :  { %609 = vrot.lane.b32.xlu1 %v1664_v62, %s1705_s26 }
 0x67e   :  { %v622_v9 = vpop.permute.xlu0 %621 }
 0x67f   :  { %vm623_vm10 = vcmp.eq.s32.totalorder %v622_v9, 1 }
 0x682   :  { %v630_v10 = vpop.permute.xlu0 %629 }
 0x6ed   :  { %v610_v4 = vpop.permute.xlu1 %609 }
 0x6ee   :  { %v612_v6 = vmul.f32 %v610_v4, %v607_v63 }
 0x6f0   :  { %v617_v7 = vadd.f32 %v616_v5, %v612_v6 }
 0x6f2   :  { %v625_v8 = vrot.slane %v617_v7, 2  ;;  %v800_v7 = vsel %vm799_vm13, 1, %v1701_v0 }
 0x6f4   :  { %626 = vrot.lane.b32.xlu1 %v625_v8, %s1705_s26 }
 0x766   :  { %v627_v11 = vpop.permute.xlu1 %626 }
 0x767   :  { %v632_v12 = vsel %vm623_vm10, %v627_v11, %v630_v10  ;;  %vm1350_vm10 = vcmask 254976  }
 0x768   :  { %v633_v14 = vpack.c.bf16 %v632_v12, %v632_v12  ;;  %v704_v33 = vrot.slane %v632_v12, 4 }
 0x76a   :  { %1529 = vmatmul.mubr.msk.bf16.vlgmr.msra.gmra.mrb[20].mxu1 %vm463_vm8, %v633_v14 }
 0x76b   :  { %1541 = vmatpush3.bf16.msra.mxu1 %v1867_v45  ;;  %1544 = vmatprep.mubr.msk.bf16.mxu1 %vm1703_vm1, %v1702_v2 }
 0x76c   :  { %1542 = vmatprep.subr.bf16.mxu1 %v1702_v2 }
 0x76f   :  { %1543 = vmatpush3.bf16.msra.mxu1 %v1874_v46 }
 0x770   :  { %1556 = vmatprep.subr.bf16.mxu1 %v1702_v2 }
 0x83d   :  { %v671_v16 = vpop.f32.mrb[20].mxu1 }
 0x83e   :  { %v672_v17 = vadd.f32 %v671_v16, %v1914_v15  ;;  %v1530_v18 = vpop.f32.mrb[21].mxu1 }
 0x83f   :  { %v674_v19 = vpop.f32.mrb[22].mxu1 }
 0x840   :  { %v678_v20 = vrot.slane %v672_v17, 4  ;;  %v1531_v22 = vpop.f32.mrb[23].mxu1 }
 0x842   :  { %687 = vrot.lane.b32.xlu1 %v678_v20, %s1704_s25  ;;  %v680_v23 = vadd.f32 %v678_v20, %v1918_v21 }
 0x844   :  { %v1393_v24 = vmul.f32 -1.442695, %v680_v23 }
 0x846   :  { %1665 = vpow2.f32 %v1393_v24 }
 0x850   :  { %v1666_v25 = vpop.eup %1665 }
 0x851   :  { %v684_v27 = vadd.f32 1.0, %v1666_v25 }
 0x853   :  { %1667 = vrcp.f32 %v684_v27  ;;  %v886_v27 = vsel %vm885_vm15, 1, %v1701_v0 }
 0x85d   :  { %v1668_v28 = vpop.eup %1667 }
 0x85e   :  { %v697_v39 = vsub.f32 1.0, %v1668_v28 }
 0x8b4   :  { %v688_v29 = vpop.permute.xlu1 %687 }
 0x8b5   :  { %v690_v31 = vmul.f32 %v1668_v28, %v688_v29 }
 0x8b7   :  { %692 = vrot.lane.b32.xlu0 %v690_v31, %s1704_s25 }
 0x8bb   :  { %705 = vrot.lane.b32.xlu0 %v704_v33, %s1706_s27 }
 0x929   :  { %v693_v34 = vpop.permute.xlu0 %692 }
 0x92a   :  { %v695_v35 = vadd.f32 %v693_v34, %v1918_v21 }
 0x92c   :  { %1669 = vtanh.f32 %v695_v35 }
 0x92d   :  { %v706_v38 = vpop.permute.xlu0 %705 }
 0x92e   :  { %v708_v41 = vmul.f32 %v1668_v28, %v706_v38 }
 0x936   :  { %v1670_v36 = vpop.eup %1669 }
 0x937   :  { %699 = vrot.lane.b32.xlu1 %v1670_v36, %s1705_s26 }
 0x93b   :  { %713 = vperm.xlu1 %1607, %v711_v37  }
 0x9a9   :  { %v700_v40 = vpop.permute.xlu1 %699 }
 0x9aa   :  { %v702_v42 = vmul.f32 %v700_v40, %v697_v39 }
 0x9ac   :  { %v709_v43 = vadd.f32 %v708_v41, %v702_v42 }
 0x9ae   :  { %v717_v44 = vrot.slane %v709_v43, 4 }
 0x9b0   :  { %718 = vrot.lane.b32.xlu0 %v717_v44, %s1705_s26 }
 0x9ba   :  { %v714_v47 = vpop.permute.xlu1 %713 }
 0x9bb   :  { %vm715_vm12 = vcmp.eq.s32.totalorder %v714_v47, 1 }
 0xa22   :  { %v719_v48 = vpop.permute.xlu0 %718 }
 0xa23   :  { %v721_v49 = vsel %vm715_vm12, %v719_v48, %v632_v12 }
 0xa24   :  { %v722_v50 = vpack.c.bf16 %v721_v49, %v721_v49  ;;  %v793_v1 = vrot.slane %v721_v49, 2 }
 0xa26   :  { %1537 = vmatmul.mubr.msk.bf16.vlgmr.msra.gmra.mrb[4].mxu0 %vm463_vm8, %v722_v50 }
 0xa27   :  { %1549 = vmatpush3.bf16.msra.mxu0 %v1867_v45  ;;  %1552 = vmatprep.mubr.msk.bf16.mxu0 %vm1703_vm1, %v1702_v2 }
 0xa28   :  { %1550 = vmatprep.subr.bf16.mxu0 %v1702_v2 }
 0xa2b   :  { %1551 = vmatpush3.bf16.msra.mxu0 %v1874_v46 }
 0xa2c   :  { %1564 = vmatprep.subr.bf16.mxu0 %v1702_v2 }
 0xaf9   :  { %v760_v51 = vpop.f32.mrb[4].mxu0 }
 0xafa   :  { %v761_v52 = vadd.f32 %v760_v51, %v1914_v15  ;;  %v1538_v53 = vpop.f32.mrb[5].mxu0 }
 0xafb   :  { %v763_v54 = vpop.f32.mrb[6].mxu0 }
 0xafc   :  { %v767_v55 = vrot.slane %v761_v52, 2  ;;  %v1539_v56 = vpop.f32.mrb[7].mxu0 }
 0xafe   :  { %776 = vrot.lane.b32.xlu1 %v767_v55, %s1704_s25  ;;  %v769_v57 = vadd.f32 %v767_v55, %v1918_v21 }
 0xb00   :  { %v1395_v58 = vmul.f32 -1.442695, %v769_v57 }
 0xb02   :  { %1671 = vpow2.f32 %v1395_v58 }
 0xb0c   :  { %v1672_v59 = vpop.eup %1671 }
 0xb0d   :  { %v773_v60 = vadd.f32 1.0, %v1672_v59 }
 0xb0f   :  { %1673 = vrcp.f32 %v773_v60 }
 0xb19   :  { %v1674_v61 = vpop.eup %1673 }
 0xb1a   :  { %v786_v9 = vsub.f32 1.0, %v1674_v61 }
 0xb70   :  { %v777_v62 = vpop.permute.xlu1 %776 }
 0xb71   :  { %v779_v63 = vmul.f32 %v1674_v61, %v777_v62 }
 0xb73   :  { %781 = vrot.lane.b32.xlu0 %v779_v63, %s1704_s25  ;;  %v971_v63 = vsel %vm970_vm3, 1, %v1701_v0 }
 0xb77   :  { %794 = vrot.lane.b32.xlu0 %v793_v1, %s1706_s27 }
 0xbe5   :  { %v782_v4 = vpop.permute.xlu0 %781 }
 0xbe6   :  { %v784_v5 = vadd.f32 %v782_v4, %v1918_v21 }
 0xbe8   :  { %1675 = vtanh.f32 %v784_v5 }
 0xbe9   :  { %v795_v8 = vpop.permute.xlu0 %794 }
 0xbea   :  { %v797_v11 = vmul.f32 %v1674_v61, %v795_v8 }
 0xbf2   :  { %v1676_v6 = vpop.eup %1675 }
 0xbf3   :  { %788 = vrot.lane.b32.xlu1 %v1676_v6, %s1705_s26 }
 0xbf7   :  { %802 = vperm.xlu1 %1607, %v800_v7  }
 0xc65   :  { %v789_v10 = vpop.permute.xlu1 %788 }
 0xc66   :  { %v791_v12 = vmul.f32 %v789_v10, %v786_v9 }
 0xc68   :  { %v798_v14 = vadd.f32 %v797_v11, %v791_v12 }
 0xc6a   :  { %v806_v16 = vrot.slane %v798_v14, 6 }
 0xc6c   :  { %807 = vrot.lane.b32.xlu0 %v806_v16, %s1705_s26 }
 0xc76   :  { %v803_v17 = vpop.permute.xlu1 %802 }
 0xc77   :  { %vm804_vm14 = vcmp.eq.s32.totalorder %v803_v17, 1 }
 0xcde   :  { %v808_v21 = vpop.permute.xlu0 %807 }
 0xcdf   :  { %v810_v18 = vsel %vm804_vm14, %v808_v21, %v721_v49 }
 0xce0   :  { %v811_v19 = vpack.c.bf16 %v810_v18, %v810_v18 }
 0xce2   :  { %1545 = vmatmul.mubr.msk.bf16.vlgmr.msra.gmra.mrb[24].mxu1 %vm463_vm8, %v811_v19 }
 0xce3   :  { %1557 = vmatpush3.bf16.msra.mxu1 %v1867_v45  ;;  %1560 = vmatprep.mubr.msk.bf16.mxu1 %vm1703_vm1, %v1702_v2 }
 0xce4   :  { %1558 = vmatprep.subr.bf16.mxu1 %v1702_v2 }
 0xce7   :  { %1559 = vmatpush3.bf16.msra.mxu1 %v1874_v46 }
 0xce8   :  { %1572 = vmatprep.subr.bf16.mxu1 %v1702_v2 }
 0xdb5   :  { %v849_v20 = vpop.f32.mrb[24].mxu1 }
 0xdb6   :  { %v850_v22 = vadd.f32 %v849_v20, %v1914_v15  ;;  %v1546_v23 = vpop.f32.mrb[25].mxu1 }
 0xdb7   :  { %v852_v24 = vpop.f32.mrb[26].mxu1 }
 0xdb8   :  { %863 = vrot.lane.b32.xlu1 %v850_v22, %s1704_s25  ;;  %v1547_v25 = vpop.f32.mrb[27].mxu1  ;;  %v855_v28 = vadd.f32 %v850_v22, %v1911_v13 }
 0xdba   :  { %v1397_v29 = vmul.f32 -1.442695, %v855_v28 }
 0xdbc   :  { %888 = vperm.xlu1 %1607, %v886_v27   ;;  %1677 = vpow2.f32 %v1397_v29 }
 0xdc0   :  { %880 = vrot.lane.b32.xlu1 %v810_v18, %s1706_s27 }
 0xdc6   :  { %v1678_v31 = vpop.eup %1677 }
 0xdc7   :  { %v859_v33 = vadd.f32 1.0, %v1678_v31 }
 0xdc9   :  { %1679 = vrcp.f32 %v859_v33 }
 0xdd3   :  { %v1680_v34 = vpop.eup %1679 }
 0xdd4   :  { %v873_v42 = vsub.f32 1.0, %v1680_v34 }
 0xe2a   :  { %v864_v35 = vpop.permute.xlu1 %863 }
 0xe2b   :  { %v866_v36 = vmul.f32 %v1680_v34, %v864_v35 }
 0xe2d   :  { %868 = vrot.lane.b32.xlu0 %v866_v36, %s1704_s25 }
 0xe3b   :  { %v889_v40 = vpop.permute.xlu1 %888 }
 0xe3c   :  { %vm890_vm2 = vcmp.eq.s32.totalorder %v889_v40, 1  ;;  %v1063_v40 = vsel %vm1062_vm5, 1, %v1701_v0 }
 0xe3f   :  { %v881_v41 = vpop.permute.xlu1 %880 }
 0xe40   :  { %v883_v44 = vmul.f32 %v1680_v34, %v881_v41 }
 0xe9f   :  { %v869_v37 = vpop.permute.xlu0 %868 }
 0xea0   :  { %v871_v38 = vadd.f32 %v869_v37, %v1911_v13 }
 0xea2   :  { %1681 = vtanh.f32 %v871_v38 }
 0xeac   :  { %v1682_v39 = vpop.eup %1681 }
 0xead   :  { %875 = vrot.lane.b32.xlu0 %v1682_v39, %s1705_s26 }
 0xf1f   :  { %v876_v43 = vpop.permute.xlu0 %875 }
 0xf20   :  { %v878_v47 = vmul.f32 %v876_v43, %v873_v42 }
 0xf22   :  { %v884_v48 = vadd.f32 %v883_v44, %v878_v47 }
 0xf24   :  { %v891_v49 = vsel %vm890_vm2, %v884_v48, %v881_v41 }
 0xf25   :  { %v892_v50 = vpack.c.bf16 %v891_v49, %v891_v49  ;;  %v966_v7 = vrot.slane %v891_v49, 6 }
 0xf27   :  { %894 = vrot.lane.b32.xlu0 %v892_v50, %s1705_s26 }
 0xf99   :  { %v895_v51 = vpop.permute.xlu0 %894 }
 0xf9a   :  { %1553 = vmatmul.mubr.msk.bf16.vlgmr.msra.gmra.mrb[8].mxu0 %vm463_vm8, %v895_v51 }
 0xf9b   :  { %1565 = vmatpush3.bf16.msra.mxu0 %v1867_v45  ;;  %1568 = vmatprep.mubr.msk.bf16.mxu0 %vm1703_vm1, %v1702_v2 }
 0xf9c   :  { %1566 = vmatprep.subr.bf16.mxu0 %v1702_v2 }
 0xf9f   :  { %1567 = vmatpush3.bf16.msra.mxu0 %v1874_v46 }
 0xfa0   :  { %1580 = vmatprep.subr.bf16.mxu0 %v1702_v2 }
0x106d   :  { %v933_v52 = vpop.f32.mrb[8].mxu0 }
0x106e   :  { %v934_v53 = vadd.f32 %v933_v52, %v1914_v15  ;;  %v1554_v54 = vpop.f32.mrb[9].mxu0 }
0x106f   :  { %v936_v55 = vpop.f32.mrb[10].mxu0 }
0x1070   :  { %v940_v56 = vrot.slane %v934_v53, 6  ;;  %v1555_v57 = vpop.f32.mrb[11].mxu0 }
0x1072   :  { %949 = vrot.lane.b32.xlu1 %v940_v56, %s1704_s25  ;;  %v942_v45 = vadd.f32 %v940_v56, %v1911_v13 }
0x1074   :  { %v1399_v58 = vmul.f32 -1.442695, %v942_v45 }
0x1076   :  { %1683 = vpow2.f32 %v1399_v58 }
0x1080   :  { %v1684_v59 = vpop.eup %1683 }
0x1081   :  { %v946_v60 = vadd.f32 1.0, %v1684_v59 }
0x1083   :  { %1685 = vrcp.f32 %v946_v60 }
0x108d   :  { %v1686_v61 = vpop.eup %1685 }
0x108e   :  { %v959_v6 = vsub.f32 1.0, %v1686_v61  ;;  %v968_v9 = vmul.f32 %v1686_v61, %v966_v7 }
0x10e4   :  { %v950_v46 = vpop.permute.xlu1 %949 }
0x10e5   :  { %v952_v62 = vmul.f32 %v1686_v61, %v950_v46 }
0x10e7   :  { %954 = vrot.lane.b32.xlu0 %v952_v62, %s1704_s25  ;;  %v292_v62 = vsub.s32 2, %v1837_v30 }
0x10eb   :  { %973 = vperm.xlu0 %1606, %v971_v63   ;;  %v293_v63 = vrot.slane %v1843_v32, %v292_v62 }
0x10ef   :  { %981 = vrot.lane.b32.xlu0 %v891_v49, %s1705_s26 }
0x1159   :  { %v955_v1 = vpop.permute.xlu0 %954 }
0x115a   :  { %v957_v4 = vadd.f32 %v955_v1, %v1911_v13 }
0x115c   :  { %1687 = vtanh.f32 %v957_v4 }
0x1166   :  { %v1688_v5 = vpop.eup %1687 }
0x1167   :  { %961 = vrot.lane.b32.xlu1 %v1688_v5, %s1705_s26 }
0x116a   :  { %v974_v14 = vpop.permute.xlu0 %973 }
0x116b   :  { %vm975_vm4 = vcmp.eq.s32.totalorder %v974_v14, 1  ;;  %v1643_v14 = vld [vmem:[%s2093_s1 + $0xdc] sm:$0xff]  }
0x116e   :  { %v982_v16 = vpop.permute.xlu0 %981 }
0x11d9   :  { %v962_v8 = vpop.permute.xlu1 %961 }
0x11da   :  { %v964_v10 = vmul.f32 %v962_v8, %v959_v6 }
0x11dc   :  { %v969_v11 = vadd.f32 %v968_v9, %v964_v10 }
0x11de   :  { %v977_v12 = vrot.slane %v969_v11, 2 }
0x11e0   :  { %978 = vrot.lane.b32.xlu1 %v977_v12, %s1705_s26 }
0x1252   :  { %v979_v17 = vpop.permute.xlu1 %978 }
0x1253   :  { %v984_v21 = vsel %vm975_vm4, %v979_v17, %v982_v16  ;;  %v1646_v16 = vld [vmem:[%s2093_s1 + $0xf4] sm:$0xff]   ;;  %v1647_v17 = vld [vmem:[%s2093_s1 + $0xfc] sm:$0xff]  }
0x1254   :  { %v985_v18 = vpack.c.bf16 %v984_v21, %v984_v21  ;;  %v1056_v36 = vrot.slane %v984_v21, 4 }
0x1256   :  { %1561 = vmatmul.mubr.msk.bf16.vlgmr.msra.gmra.mrb[28].mxu1 %vm463_vm8, %v985_v18  ;;  %v1650_v18 = vld [vmem:[%s2093_s1 + $0x10c] sm:$0xff]  }
0x1257   :  { %1576 = vmatprep.mubr.msk.bf16.mxu1 %vm1703_vm1, %v1702_v2 }
0x1329   :  { %v1023_v19 = vpop.f32.mrb[28].mxu1 }
0x132a   :  { %v1024_v20 = vadd.f32 %v1023_v19, %v1914_v15  ;;  %v1562_v22 = vpop.f32.mrb[29].mxu1  ;;  %v1651_v19 = vld [vmem:[%s2093_s1 + $0x124] sm:$0xff]  }
0x132b   :  { %v1026_v23 = vpop.f32.mrb[30].mxu1 }
0x132c   :  { %v1030_v24 = vrot.slane %v1024_v20, 4  ;;  %v1563_v25 = vpop.f32.mrb[31].mxu1  ;;  %v1652_v20 = vld [vmem:[%s2093_s1 + $0x114] sm:$0xff]  }
0x132e   :  { %1039 = vrot.lane.b32.xlu1 %v1030_v24, %s1704_s25  ;;  %v1032_v27 = vadd.f32 %v1030_v24, %v1911_v13 }
0x1330   :  { %v1401_v28 = vmul.f32 -1.442695, %v1032_v27 }
0x1332   :  { %1689 = vpow2.f32 %v1401_v28 }
0x133c   :  { %v1690_v29 = vpop.eup %1689 }
0x133d   :  { %v1036_v31 = vadd.f32 1.0, %v1690_v29 }
0x133f   :  { %1691 = vrcp.f32 %v1036_v31 }
0x1349   :  { %v1692_v33 = vpop.eup %1691 }
0x134a   :  { %v1049_v42 = vsub.f32 1.0, %v1692_v33 }
0x13a0   :  { %v1040_v34 = vpop.permute.xlu1 %1039 }
0x13a1   :  { %v1042_v35 = vmul.f32 %v1692_v33, %v1040_v34 }
0x13a3   :  { %1044 = vrot.lane.b32.xlu0 %v1042_v35, %s1704_s25 }
0x13a7   :  { %1057 = vrot.lane.b32.xlu0 %v1056_v36, %s1706_s27 }
0x1415   :  { %v1045_v37 = vpop.permute.xlu0 %1044 }
0x1416   :  { %v1047_v38 = vadd.f32 %v1045_v37, %v1911_v13 }
0x1418   :  { %1693 = vtanh.f32 %v1047_v38 }
0x1419   :  { %v1058_v41 = vpop.permute.xlu0 %1057 }
0x141a   :  { %v1060_v44 = vmul.f32 %v1692_v33, %v1058_v41 }
0x1422   :  { %v1694_v39 = vpop.eup %1693 }
0x1423   :  { %1051 = vrot.lane.b32.xlu1 %v1694_v39, %s1705_s26 }
0x1427   :  { %1065 = vperm.xlu1 %1607, %v1063_v40  }
0x1495   :  { %v1052_v43 = vpop.permute.xlu1 %1051 }
0x1496   :  { %v1054_v47 = vmul.f32 %v1052_v43, %v1049_v42 }
0x1498   :  { %v1061_v48 = vadd.f32 %v1060_v44, %v1054_v47  ;;  %v1347_v47 = vsub.s32 5, %v1837_v30 }
0x149a   :  { %v1069_v49 = vrot.slane %v1061_v48, 4  ;;  %v1348_v48 = vrot.slane %v1843_v32, %v1347_v47 }
0x149c   :  { %1070 = vrot.lane.b32.xlu0 %v1069_v49, %s1705_s26 }
0x14a6   :  { %v1066_v50 = vpop.permute.xlu1 %1065 }
0x14a7   :  { %vm1067_vm6 = vcmp.eq.s32.totalorder %v1066_v50, 1 }
0x150e   :  { %v1071_v51 = vpop.permute.xlu0 %1070 }
0x150f   :  { %v2023_v52 = vsel %vm1067_vm6, %v1071_v51, %v984_v21  ;;  %v1648_v21 = vld [vmem:[%s2093_s1 + $0x104] sm:$0xff]  }
0x1510   :  { %v1074_v53 = vpack.c.bf16 %v2023_v52, %v2023_v52  ;;  %v1145_v7 = vrot.slane %v2023_v52, 2 }
0x1512   :  { %1569 = vmatmul.mubr.msk.bf16.vlgmr.msra.gmra.mrb[12].mxu0 %vm463_vm8, %v1074_v53 }
0x1513   :  { %1596 = vmatprep.mubr.msk.bf16.mxu0 %vm1703_vm1, %v1702_v2  ;;  %vm1151_vm1 = vcmp.gt.s32.totalorder %v1830_v26, 7  ;;  %1581 = vmatpush3.bf16.msra.mxu0 %v1643_v14  ;;  %v1649_v26 = vld [vmem:[%s2093_s1 + $0x11c] sm:$0xff]  }
0x1514   :  { %1582 = vmatprep.subr.bf16.mxu0 %v1702_v2  ;;  %1573 = vmatpush3.bf16.msra.mxu1 %v1649_v26 }
0x1515   :  { %1574 = vmatprep.subr.bf16.mxu1 %v1702_v2 }
0x1518   :  { %1575 = vmatpush3.bf16.msra.mxu1 %v1651_v19 }
0x15e5   :  { %v1112_v54 = vpop.f32.mrb[12].mxu0 }
0x15e6   :  { %v1113_v55 = vadd.f32 %v1112_v54, %v1914_v15  ;;  %v1570_v56 = vpop.f32.mrb[13].mxu0  ;;  %v356_v15 = vadd.f32 %v1906_v3, %v293_v63  ;;  %v1152_v3 = vsel %vm1151_vm1, 1, %v1701_v0  ;;  %v1645_v0 = vld [vmem:[%s2093_s1 + $0xec] sm:$0xff]  }
0x15e7   :  { %v1115_v57 = vpop.f32.mrb[14].mxu0 }
0x15e8   :  { %v1119_v45 = vrot.slane %v1113_v55, 2  ;;  %v1571_v58 = vpop.f32.mrb[15].mxu0  ;;  %v361_v6 = vmax.f32 %v356_v15, 0.0 }
0x15ea   :  { %1128 = vrot.lane.b32.xlu1 %v1119_v45, %s1704_s25  ;;  %v1121_v59 = vadd.f32 %v1119_v45, %v1911_v13  ;;  %v1164_v8 = vrot.slane %v361_v6, 2  ;;  %v1168_v12 = vrot.slane %v361_v6, 4  ;;  %v1172_v31 = vrot.slane %v361_v6, 6 }
0x15ec   :  { %v1403_v60 = vmul.f32 -1.442695, %v1121_v59 }
0x15ee   :  { %1695 = vpow2.f32 %v1403_v60 }
0x15f8   :  { %v1696_v61 = vpop.eup %1695 }
0x15f9   :  { %v1125_v46 = vadd.f32 1.0, %v1696_v61 }
0x15fb   :  { %1697 = vrcp.f32 %v1125_v46 }
0x1605   :  { %v1698_v1 = vpop.eup %1697 }
0x1606   :  { %v1138_v23 = vsub.f32 1.0, %v1698_v1 }
0x165c   :  { %v1129_v4 = vpop.permute.xlu1 %1128 }
0x165d   :  { %v1131_v5 = vmul.f32 %v1698_v1, %v1129_v4 }
0x165f   :  { %1133 = vrot.lane.b32.xlu0 %v1131_v5, %s1704_s25 }
0x1663   :  { %1146 = vrot.lane.b32.xlu0 %v1145_v7, %s1706_s27 }
0x1667   :  { %1165 = vrot.lane.b32.xlu0 %v1164_v8, %s1706_s27 }
0x16d1   :  { %v1134_v9 = vpop.permute.xlu0 %1133 }
0x16d2   :  { %v1136_v10 = vadd.f32 %v1134_v9, %v1911_v13  ;;  %v1644_v13 = vld [vmem:[%s2093_s1 + $0xe4] sm:$0xff]  }
0x16d3   :  { %1583 = vmatpush3.bf16.msra.mxu0 %v1644_v13 }
0x16d4   :  { %1699 = vtanh.f32 %v1136_v10  ;;  %1584 = vmatprep.subr.bf16.mxu0 %v1702_v2 }
0x16d5   :  { %v1147_v22 = vpop.permute.xlu0 %1146 }
0x16d6   :  { %v1149_v25 = vmul.f32 %v1698_v1, %v1147_v22 }
0x16d7   :  { %1585 = vmatpush3.bf16.msra.mxu0 %v1645_v0 }
0x16d8   :  { %1586 = vmatprep.subr.bf16.mxu0 %v1702_v2 }
0x16d9   :  { %v1166_v34 = vpop.permute.xlu0 %1165 }
0x16da   :  { %v1176_v37 = vsel %vm463_vm8, %v361_v6, %v1166_v34 }
0x16db   :  { %1587 = vmatpush3.bf16.msra.mxu0 %v1646_v16 }
0x16dc   :  { %1588 = vmatprep.subr.bf16.mxu0 %v1702_v2 }
0x16de   :  { %v1700_v11 = vpop.eup %1699 }
0x16df   :  { %1140 = vrot.lane.b32.xlu1 %v1700_v11, %s1705_s26  ;;  %1589 = vmatpush3.bf16.msra.mxu0 %v1647_v17 }
0x16e0   :  { %1590 = vmatprep.subr.bf16.mxu0 %v1702_v2 }
0x16e3   :  { %1154 = vperm.xlu1 %1607, %v1152_v3   ;;  %1591 = vmatpush3.bf16.msra.mxu0 %v1648_v21 }
0x16e4   :  { %1592 = vmatprep.subr.bf16.mxu0 %v1702_v2 }
0x16e7   :  { %1169 = vrot.lane.b32.xlu1 %v1168_v12, %s1704_s25  ;;  %1593 = vmatpush3.bf16.msra.mxu0 %v1650_v18 }
0x16e8   :  { %1594 = vmatprep.subr.bf16.mxu0 %v1702_v2 }
0x16eb   :  { %1595 = vmatpush3.bf16.msra.mxu0 %v1652_v20 }
0x1751   :  { %v1141_v24 = vpop.permute.xlu1 %1140 }
0x1752   :  { %v1143_v27 = vmul.f32 %v1141_v24, %v1138_v23 }
0x1754   :  { %v1150_v28 = vadd.f32 %v1149_v25, %v1143_v27 }
0x1756   :  { %v1158_v29 = vrot.slane %v1150_v28, 6 }
0x1758   :  { %v1608_v33 = vpack.i.bf16 %v1172_v31, %v1158_v29 }
0x175a   :  { %1609 = vrot.lane.b32.xlu0 %v1608_v33, %s1705_s26 }
0x1762   :  { %v1155_v2 = vpop.permute.xlu1 %1154 }
0x1763   :  { %vm1156_vm9 = vcmp.eq.s32.totalorder %v1155_v2, 1 }
0x1766   :  { %v1170_v35 = vpop.permute.xlu1 %1169 }
0x1767   :  { %v1177_v40 = vsel %vm126_vm0, %v1176_v37, %v1170_v35 }
0x17cc   :  { %v1610_v36 = vpop.permute.xlu0 %1609 }
0x17cd   :  { %v1612_v38 = vunpack.i.h.bf16 %v1610_v36  ;;  %v1611_v39 = vunpack.i.l.bf16 %v1610_v36 }
0x17cf   :  { %v1179_v41 = vsel %vm1178_vm7, %v1177_v40, %v1612_v38  ;;  %v1162_v42 = vsel %vm1156_vm9, %v1611_v39, %v2023_v52 }
0x17d0   :  { %v1180_v43 = vpack.c.bf16 %v1179_v41, %v1179_v41  ;;  %v1197_v44 = vpack.c.bf16 %v1162_v42, %v1162_v42 }
0x17d2   :  { %1577 = vmatmul.mubr.msk.bf16.vlgmr.msra.gmra.mrb[32].mxu1 %vm463_vm8, %v1197_v44  ;;  %1597 = vmatmul.mubr.bf16.vlgmr.msra.gmra.mrb[16].mxu0 %v1180_v43 }
0x18a5   :  { %v1251_v49 = vpop.f32.mrb[32].mxu1  ;;  %v1339_v50 = vpop.f32.mrb[16].mxu0 }
0x18a6   :  { %v1340_v51 = vadd.f32 %v1339_v50, %v1251_v49  ;;  %v1578_v53 = vpop.f32.mrb[33].mxu1  ;;  %v1598_v54 = vpop.f32.mrb[17].mxu0 }
0x18a7   :  { %v1254_v55 = vpop.f32.mrb[34].mxu1  ;;  %v1342_v56 = vpop.f32.mrb[18].mxu0 }
0x18a8   :  { %v1349_v57 = vadd.f32 %v1348_v48, %v1340_v51  ;;  %v1579_v45 = vpop.f32.mrb[35].mxu1  ;;  %v1599_v52 = vpop.f32.mrb[19].mxu0 }
0x18aa   :  { %1351 = vst.msk [vmem:[%s2097_s4] sm:$0x3] %vm1350_vm10, %v1349_v57 }

</bundles_post_ra>
